<compile_context>
chip_gen: v5e
topology: v5e:2x2
jax: 0.10.0
libtpu: 0.0.40
codegen_flags: <defaults>
</compile_context>

<pallas_src>
import functools

import jax
import jax.numpy as jnp
import numpy as np
from jax import lax
from jax.experimental import pallas as pl
from jax.experimental.pallas import tpu as pltpu

EPS = 1e-5          # BatchNorm2d default eps
NEG_SLOPE = 0.01    # LeakyReLU default negative_slope


def _triple_conv_kernel(x_ref, wt_ref, g_ref, be_ref, fold_ref, spread_ref,
                        o_ref, *, N, H, W, C):
    """Fused (conv3x3 + BN(batch stats) + LeakyReLU) x 3, single grid point.

    x_ref:      (N*H, W*C)        layer-1 input (channels-last, lane-flattened)
    wt_ref:     (3, 3*W*C, W*C)   banded conv weights [layer, (dy,x,ci), (w,co)]
    g_ref:      (3, C)            BN gamma per layer
    be_ref:     (3, C)            BN beta per layer
    fold_ref:   (W*C, C)          0/1 matrix: per-lane -> per-channel fold
    spread_ref: (C, W*C)          0/1 matrix: per-channel -> per-lane spread
    o_ref:      (N*H, W*C)        output, lane-dense
    """
    NH, WC = N * H, W * C
    inv_n = jnp.float32(1.0 / (N * H * W))
    mm_dtype = wt_ref.dtype                       # matmul operand dtype (bf16/f32)

    fold = fold_ref[...]                          # (W*C, C)
    spread = spread_ref[...]                      # (C, W*C)

    # ---- constants shared by all three layers (computed once) ----------------
    # Shifting the flat N*H row axis by +/-1 wraps across image boundaries;
    # those rows must read the zero H-halo instead -> mask them to 0.
    row = lax.broadcasted_iota(jnp.int32, (NH, WC), 0)
    keep_up = (row % H) != 0                      # a row above exists in the image
    keep_dn = (row % H) != (H - 1)                # a row below exists in the image
    # Rotate-convention probe (one extra int roll, once): selects which of the
    # two +/-1 rotations carries "row-1" content, independent of the hardware
    # rotate direction convention.
    roll1_is_prev = pltpu.roll(row, 1, axis=0) == ((row + NH - 1) % NH)
    is_scale_row = lax.broadcasted_iota(jnp.int32, (2, C), 0) == 0

    act = x_ref[...]                              # (N*H, W*C) f32
    for layer in range(3):
        # ---- 3x3 conv: one K=3*W*C MXU matmul --------------------------------
        # H-halo via XLU sublane rolls + mask; W-halo is encoded in the banded
        # weight, so no activation padding / copying is needed.
        ra = pltpu.roll(act, 1, axis=0)
        rb = pltpu.roll(act, NH - 1, axis=0)
        above = jnp.where(roll1_is_prev, ra, rb)          # content of row h-1
        below = jnp.where(roll1_is_prev, rb, ra)          # content of row h+1
        up = jnp.where(keep_up, above, 0.0)               # zero top H-halo
        dn = jnp.where(keep_dn, below, 0.0)               # zero bottom H-halo
        lhs = jnp.concatenate([up, act, dn], axis=1).astype(mm_dtype)
        acc = jnp.dot(lhs, wt_ref[layer],
                      preferred_element_type=jnp.float32)  # (N*H, W*C) f32

        # ---- BatchNorm2d (training mode): one-pass batch stats, f32 ----------
        folded = jnp.dot(jnp.concatenate([acc, acc * acc], axis=0), fold,
                         preferred_element_type=jnp.float32)   # (2*N*H, C)
        ch_s = jnp.sum(folded[:NH], axis=0, keepdims=True)     # (1, C) sum
        ch_ss = jnp.sum(folded[NH:], axis=0, keepdims=True)    # (1, C) sum of sq
        mean = ch_s * inv_n
        var = jnp.maximum(ch_ss * inv_n - mean * mean, 0.0)
        scale_c = g_ref[layer:layer + 1, :] * lax.rsqrt(var + EPS)   # (1, C)
        shift_c = be_ref[layer:layer + 1, :] - mean * scale_c        # (1, C)
        sc_sh = jnp.dot(jnp.where(is_scale_row, scale_c, shift_c), spread,
                        preferred_element_type=jnp.float32)          # (2, W*C)

        y = acc * sc_sh[0:1, :] + sc_sh[1:2, :]   # BN normalize + affine (1 FMA)
        y = jnp.where(y >= 0, y, NEG_SLOPE * y)   # LeakyReLU

        if layer < 2:
            act = y                               # stays in vregs / VMEM
        else:
            o_ref[...] = y                        # full-lane, unmasked store


def _banded_weight(w_hwio, W):
    """(3,3,C,C) HWIO conv weight -> (3*W*C, W*C) fused-K banded matmul weight.

    out[dy*W*C + x*C + ci, w*C + co] = w[dy, x-w+1, ci, co] if 0 <= x-w+1 < 3
    else 0.  The zero band implements the width-direction 'same' zero padding;
    the dy blocks stacked along K match the [row-above | row | row-below] LHS.
    """
    kh, kw, C, _ = w_hwio.shape
    dx = jnp.arange(W)[:, None] - jnp.arange(W)[None, :] + 1       # (W, W)
    valid = (dx >= 0) & (dx < kw)
    t = w_hwio[:, jnp.clip(dx, 0, kw - 1)]                         # (3, W, W, C, C)
    t = t * valid[None, :, :, None, None].astype(w_hwio.dtype)
    t = jnp.transpose(t, (0, 1, 3, 2, 4))                          # (3, W, C, W, C)
    return t.reshape(kh * W * C, W * C)                            # (3*W*C, W*C)


def triple_conv_forward(x_nchw, params, *, matmul_dtype=jnp.bfloat16):
    """TripleConv forward: (N, Cin, H, W) -> (N, Cout, H, W)."""
    N, Cin, H, W = x_nchw.shape
    Cout = params[0][0].shape[-1]
    C = max(Cin, Cout)                 # single channel width used inside the kernel
    NH, WC = N * H, W * C

    # NCHW -> NHWC, channel-pad to C, flatten (W, C) onto lanes.  (tiny glue)
    x = jnp.transpose(x_nchw, (0, 2, 3, 1))
    if Cin < C:
        x = jnp.pad(x, ((0, 0), (0, 0), (0, 0), (0, C - Cin)))
    x2 = x.reshape(NH, WC).astype(jnp.float32)

    wts, gs, bes = [], [], []
    for (w, b, gamma, beta) in params:
        ci, co = w.shape[2], w.shape[3]
        wp = jnp.pad(w, ((0, 0), (0, 0), (0, C - ci), (0, C - co)))
        wts.append(_banded_weight(wp, W))
        gs.append(jnp.pad(gamma, (0, C - co), constant_values=1.0))
        bes.append(jnp.pad(beta, (0, C - co)))
        # NOTE: conv bias `b` shifts both the activation and its batch mean,
        # so it cancels exactly under training-mode BatchNorm -> not passed in.
    wt = jnp.stack(wts).astype(matmul_dtype)              # (3, 3*W*C, W*C)
    g = jnp.stack(gs)                                     # (3, C)
    be = jnp.stack(bes)                                   # (3, C)
    eye = jnp.eye(C, dtype=jnp.float32)
    fold = jnp.tile(eye, (W, 1))                          # (W*C, C)
    spread = jnp.tile(eye, (1, W))                        # (C, W*C)

    kernel = functools.partial(_triple_conv_kernel, N=N, H=H, W=W, C=C)
    out2 = pl.pallas_call(
        kernel,
        out_shape=jax.ShapeDtypeStruct((NH, WC), jnp.float32),
        in_specs=[
            pl.BlockSpec((NH, WC), lambda: (0, 0)),
            pl.BlockSpec((3, 3 * WC, WC), lambda: (0, 0, 0)),
            pl.BlockSpec((3, C), lambda: (0, 0)),
            pl.BlockSpec((3, C), lambda: (0, 0)),
            pl.BlockSpec((WC, C), lambda: (0, 0)),
            pl.BlockSpec((C, WC), lambda: (0, 0)),
        ],
        out_specs=pl.BlockSpec((NH, WC), lambda: (0, 0)),
        # TODO(synk): at production shapes add a grid over N / N*H row tiles
        # marked "parallel" (dimension_semantics) with two-phase BN stats so
        # both v7x TensorCores work, and cap W*C per band at ~128-256 lanes
        # (tile W on the grid or switch to a 9*C-K im2col weight) so the
        # 9*(W*C)^2 banded weight stays inside v7x's 64 MiB VMEM.
    )(x2, wt, g, be, fold, spread)

    out = out2.reshape(N, H, W, C)[..., :Cout]            # free reshape (+ unpad)
    return jnp.transpose(out, (0, 3, 1, 2))               # NHWC -> NCHW


# ---------------- pure-JAX reference (for verification) ----------------
def _ref_layer(x_nhwc, w, b, gamma, beta):
    y = lax.conv_general_dilated(
        x_nhwc, w, window_strides=(1, 1), padding="SAME",
        dimension_numbers=("NHWC", "HWIO", "NHWC"))
    y = y + b.reshape(1, 1, 1, -1)
    mean = jnp.mean(y, axis=(0, 1, 2), keepdims=True)
    var = jnp.mean((y - mean) ** 2, axis=(0, 1, 2), keepdims=True)
    y = (y - mean) * lax.rsqrt(var + EPS)
    y = y * gamma.reshape(1, 1, 1, -1) + beta.reshape(1, 1, 1, -1)
    return jnp.where(y >= 0, y, NEG_SLOPE * y)


def _ref_forward(x_nchw, params):
    x = jnp.transpose(x_nchw, (0, 2, 3, 1))
    for (w, b, gamma, beta) in params:
        x = _ref_layer(x, w, b, gamma, beta)
    return jnp.transpose(x, (0, 3, 1, 2))


def init_params(key, in_channels, out_channels):
    """Deterministic synthetic parameters for the three conv+BN layers."""
    params = []
    cin = in_channels
    for _ in range(3):
        k_w, k_b, key = jax.random.split(key, 3)
        fan_in = cin * 3 * 3
        w = jax.random.normal(k_w, (3, 3, cin, out_channels),
                              dtype=jnp.float32) / np.sqrt(fan_in)
        b = 0.01 * jax.random.normal(k_b, (out_channels,), dtype=jnp.float32)
        gamma = jnp.ones((out_channels,), dtype=jnp.float32)   # BN weight init
        beta = jnp.zeros((out_channels,), dtype=jnp.float32)   # BN bias init
        params.append((w, b, gamma, beta))
        cin = out_channels
    return params


if __name__ == "__main__":
    key = jax.random.PRNGKey(0)
    k_x, k_p = jax.random.split(key)

    N, Cin, Cout, H, W = 2, 4, 8, 16, 16
    x = jax.random.normal(k_x, (N, Cin, H, W), dtype=jnp.float32)
    params = init_params(k_p, Cin, Cout)

    ref = jax.block_until_ready(_ref_forward(x, params))

    # f32-operand path: tight structural/numerical check of the fused kernel.
    out_f32 = jax.block_until_ready(
        jax.jit(functools.partial(triple_conv_forward,
                                  matmul_dtype=jnp.float32))(x, params))
    assert out_f32.shape == (N, Cout, H, W)
    np.testing.assert_allclose(np.asarray(out_f32), np.asarray(ref),
                               rtol=5e-4, atol=5e-4)

    # bf16-operand path (MXU-native); BN stats stay f32.  Looser tolerance
    # accounts for bf16 operand rounding compounded across three conv+BN layers.
    out_bf16 = jax.block_until_ready(
        jax.jit(functools.partial(triple_conv_forward,
                                  matmul_dtype=jnp.bfloat16))(x, params))
    assert out_bf16.shape == (N, Cout, H, W)
    np.testing.assert_allclose(np.asarray(out_bf16), np.asarray(ref),
                               rtol=5e-2, atol=5e-2)

    print("KERNEL_OK")
</pallas_src>

<mosaic_0001>
module attributes {stable_mosaic.version = 11 : i64} {
  func.func @_triple_conv_kernel(%arg0: memref<32x128xf32, #tpu.memory_space<vmem>>, %arg1: memref<3x384x128xf32, #tpu.memory_space<vmem>>, %arg2: memref<3x8xf32, #tpu.memory_space<vmem>>, %arg3: memref<3x8xf32, #tpu.memory_space<vmem>>, %arg4: memref<128x8xf32, #tpu.memory_space<vmem>>, %arg5: memref<8x128xf32, #tpu.memory_space<vmem>>, %arg6: memref<32x128xf32, #tpu.memory_space<vmem>>) attributes {dimension_semantics = [], scalar_prefetch = 0 : i64, scratch_operands = 0 : i64, tpu.core_type = #tpu.core_type<tc>} {
    %c0 = arith.constant 0 : index
    %c0_0 = arith.constant 0 : index
    %0 = vector.load %arg4[%c0, %c0_0] : memref<128x8xf32, #tpu.memory_space<vmem>>, vector<128x8xf32>
    %c0_1 = arith.constant 0 : index
    %c0_2 = arith.constant 0 : index
    %1 = vector.load %arg5[%c0_1, %c0_2] : memref<8x128xf32, #tpu.memory_space<vmem>>, vector<8x128xf32>
    %2 = tpu.iota {dimensions = array<i32: 0>} : vector<32x128xi32>
    %c16_i32 = arith.constant 16 : i32
    %c0_i32 = arith.constant 0 : i32
    %3 = arith.cmpi eq, %c16_i32, %c0_i32 : i32
    %c1_i32 = arith.constant 1 : i32
    %4 = arith.select %3, %c1_i32, %c16_i32 : i32
    %5 = vector.broadcast %4 : i32 to vector<32x128xi32>
    %6 = arith.remsi %2, %5 : vector<32x128xi32>
    %c0_i32_3 = arith.constant 0 : i32
    %7 = vector.broadcast %c0_i32_3 : i32 to vector<32x128xi32>
    %8 = arith.cmpi ne, %6, %7 : vector<32x128xi32>
    %c0_i32_4 = arith.constant 0 : i32
    %9 = vector.broadcast %c0_i32_4 : i32 to vector<32x128xi32>
    %10 = arith.cmpi slt, %6, %9 : vector<32x128xi32>
    %c0_i32_5 = arith.constant 0 : i32
    %11 = arith.cmpi slt, %4, %c0_i32_5 : i32
    %12 = vector.broadcast %11 : i1 to vector<32x128xi1>
    %13 = vector.broadcast %12 : vector<32x128xi1> to vector<32x128xi1>
    %14 = arith.xori %10, %13 : vector<32x128xi1>
    %15 = arith.andi %14, %8 : vector<32x128xi1>
    %16 = vector.broadcast %4 : i32 to vector<32x128xi32>
    %17 = arith.addi %6, %16 : vector<32x128xi32>
    %18 = arith.select %15, %17, %6 : vector<32x128xi1>, vector<32x128xi32>
    %c0_i32_6 = arith.constant 0 : i32
    %19 = vector.broadcast %c0_i32_6 : i32 to vector<32x128xi32>
    %20 = arith.cmpi ne, %18, %19 : vector<32x128xi32>
    %c16_i32_7 = arith.constant 16 : i32
    %c0_i32_8 = arith.constant 0 : i32
    %21 = arith.cmpi eq, %c16_i32_7, %c0_i32_8 : i32
    %c1_i32_9 = arith.constant 1 : i32
    %22 = arith.select %21, %c1_i32_9, %c16_i32_7 : i32
    %23 = vector.broadcast %22 : i32 to vector<32x128xi32>
    %24 = arith.remsi %2, %23 : vector<32x128xi32>
    %c0_i32_10 = arith.constant 0 : i32
    %25 = vector.broadcast %c0_i32_10 : i32 to vector<32x128xi32>
    %26 = arith.cmpi ne, %24, %25 : vector<32x128xi32>
    %c0_i32_11 = arith.constant 0 : i32
    %27 = vector.broadcast %c0_i32_11 : i32 to vector<32x128xi32>
    %28 = arith.cmpi slt, %24, %27 : vector<32x128xi32>
    %c0_i32_12 = arith.constant 0 : i32
    %29 = arith.cmpi slt, %22, %c0_i32_12 : i32
    %30 = vector.broadcast %29 : i1 to vector<32x128xi1>
    %31 = vector.broadcast %30 : vector<32x128xi1> to vector<32x128xi1>
    %32 = arith.xori %28, %31 : vector<32x128xi1>
    %33 = arith.andi %32, %26 : vector<32x128xi1>
    %34 = vector.broadcast %22 : i32 to vector<32x128xi32>
    %35 = arith.addi %24, %34 : vector<32x128xi32>
    %36 = arith.select %33, %35, %24 : vector<32x128xi1>, vector<32x128xi32>
    %c15_i32 = arith.constant 15 : i32
    %37 = vector.broadcast %c15_i32 : i32 to vector<32x128xi32>
    %38 = arith.cmpi ne, %36, %37 : vector<32x128xi32>
    %c1_i32_13 = arith.constant 1 : i32
    %39 = tpu.dynamic_rotate %2 by %c1_i32_13 dim 0 : vector<32x128xi32>, i32 -> vector<32x128xi32>
    %c32_i32 = arith.constant 32 : i32
    %40 = vector.broadcast %c32_i32 : i32 to vector<32x128xi32>
    %41 = arith.addi %2, %40 : vector<32x128xi32>
    %c1_i32_14 = arith.constant 1 : i32
    %42 = vector.broadcast %c1_i32_14 : i32 to vector<32x128xi32>
    %43 = arith.subi %41, %42 : vector<32x128xi32>
    %c32_i32_15 = arith.constant 32 : i32
    %c0_i32_16 = arith.constant 0 : i32
    %44 = arith.cmpi eq, %c32_i32_15, %c0_i32_16 : i32
    %c1_i32_17 = arith.constant 1 : i32
    %45 = arith.select %44, %c1_i32_17, %c32_i32_15 : i32
    %46 = vector.broadcast %45 : i32 to vector<32x128xi32>
    %47 = arith.remsi %43, %46 : vector<32x128xi32>
    %c0_i32_18 = arith.constant 0 : i32
    %48 = vector.broadcast %c0_i32_18 : i32 to vector<32x128xi32>
    %49 = arith.cmpi ne, %47, %48 : vector<32x128xi32>
    %c0_i32_19 = arith.constant 0 : i32
    %50 = vector.broadcast %c0_i32_19 : i32 to vector<32x128xi32>
    %51 = arith.cmpi slt, %47, %50 : vector<32x128xi32>
    %c0_i32_20 = arith.constant 0 : i32
    %52 = arith.cmpi slt, %45, %c0_i32_20 : i32
    %53 = vector.broadcast %52 : i1 to vector<32x128xi1>
    %54 = vector.broadcast %53 : vector<32x128xi1> to vector<32x128xi1>
    %55 = arith.xori %51, %54 : vector<32x128xi1>
    %56 = arith.andi %55, %49 : vector<32x128xi1>
    %57 = vector.broadcast %45 : i32 to vector<32x128xi32>
    %58 = arith.addi %47, %57 : vector<32x128xi32>
    %59 = arith.select %56, %58, %47 : vector<32x128xi1>, vector<32x128xi32>
    %60 = arith.cmpi eq, %39, %59 : vector<32x128xi32>
    %61 = tpu.iota {dimensions = array<i32: 0>} : vector<2x8xi32>
    %c0_i32_21 = arith.constant 0 : i32
    %62 = vector.broadcast %c0_i32_21 : i32 to vector<2x8xi32>
    %63 = arith.cmpi eq, %61, %62 : vector<2x8xi32>
    %c0_22 = arith.constant 0 : index
    %c0_23 = arith.constant 0 : index
    %64 = vector.load %arg0[%c0_22, %c0_23] : memref<32x128xf32, #tpu.memory_space<vmem>>, vector<32x128xf32>
    %c1_i32_24 = arith.constant 1 : i32
    %65 = tpu.dynamic_rotate %64 by %c1_i32_24 dim 0 : vector<32x128xf32>, i32 -> vector<32x128xf32>
    %c31_i32 = arith.constant 31 : i32
    %66 = tpu.dynamic_rotate %64 by %c31_i32 dim 0 : vector<32x128xf32>, i32 -> vector<32x128xf32>
    %67 = arith.select %60, %65, %66 : vector<32x128xi1>, vector<32x128xf32>
    %68 = arith.select %60, %66, %65 : vector<32x128xi1>, vector<32x128xf32>
    %cst = arith.constant 0.000000e+00 : f32
    %69 = vector.broadcast %cst : f32 to vector<32x128xf32>
    %70 = arith.select %20, %67, %69 : vector<32x128xi1>, vector<32x128xf32>
    %cst_25 = arith.constant 0.000000e+00 : f32
    %71 = vector.broadcast %cst_25 : f32 to vector<32x128xf32>
    %72 = arith.select %38, %68, %71 : vector<32x128xi1>, vector<32x128xf32>
    %73 = tpu.concatenate %70, %64, %72 in 1 : vector<32x128xf32>, vector<32x128xf32>, vector<32x128xf32> -> vector<32x384xf32>
    %c0_26 = arith.constant 0 : index
    %c0_27 = arith.constant 0 : index
    %c0_28 = arith.constant 0 : index
    %74 = vector.load %arg1[%c0_26, %c0_27, %c0_28] : memref<3x384x128xf32, #tpu.memory_space<vmem>>, vector<1x384x128xf32>
    %75 = vector.shape_cast %74 : vector<1x384x128xf32> to vector<384x128xf32>
    %cst_29 = arith.constant dense<0.000000e+00> : vector<32x128xf32>
    %76 = tpu.matmul %73, %75, %cst_29 {dimension_numbers = #tpu.dot_dimension_numbers<[1], [0], [0], [1], [0, 0, 1, 1], [], []>} : vector<32x384xf32>, vector<384x128xf32>, vector<32x128xf32> -> vector<32x128xf32>
    %77 = arith.mulf %76, %76 : vector<32x128xf32>
    %78 = tpu.concatenate %76, %77 in 0 : vector<32x128xf32>, vector<32x128xf32> -> vector<64x128xf32>
    %cst_30 = arith.constant dense<0.000000e+00> : vector<64x8xf32>
    %79 = tpu.matmul %78, %0, %cst_30 {dimension_numbers = #tpu.dot_dimension_numbers<[1], [0], [0], [1], [0, 0, 1, 1], [], []>} : vector<64x128xf32>, vector<128x8xf32>, vector<64x8xf32> -> vector<64x8xf32>
    %80 = vector.extract_strided_slice %79 {offsets = [0, 0], sizes = [32, 8], strides = [1, 1]} : vector<64x8xf32> to vector<32x8xf32>
    %cst_31 = arith.constant dense<0.000000e+00> : vector<8xf32>
    %81 = vector.multi_reduction <add>, %80, %cst_31 [0] : vector<32x8xf32> to vector<8xf32>
    %82 = vector.shape_cast %81 : vector<8xf32> to vector<1x8xf32>
    %83 = vector.extract_strided_slice %79 {offsets = [32, 0], sizes = [32, 8], strides = [1, 1]} : vector<64x8xf32> to vector<32x8xf32>
    %cst_32 = arith.constant dense<0.000000e+00> : vector<8xf32>
    %84 = vector.multi_reduction <add>, %83, %cst_32 [0] : vector<32x8xf32> to vector<8xf32>
    %85 = vector.shape_cast %84 : vector<8xf32> to vector<1x8xf32>
    %cst_33 = arith.constant 0.001953125 : f32
    %86 = vector.broadcast %cst_33 : f32 to vector<1x8xf32>
    %87 = arith.mulf %82, %86 : vector<1x8xf32>
    %cst_34 = arith.constant 0.001953125 : f32
    %88 = vector.broadcast %cst_34 : f32 to vector<1x8xf32>
    %89 = arith.mulf %85, %88 : vector<1x8xf32>
    %90 = arith.mulf %87, %87 : vector<1x8xf32>
    %91 = arith.subf %89, %90 : vector<1x8xf32>
    %cst_35 = arith.constant 0.000000e+00 : f32
    %92 = vector.broadcast %cst_35 : f32 to vector<1x8xf32>
    %93 = arith.maximumf %91, %92 : vector<1x8xf32>
    %c0_36 = arith.constant 0 : index
    %c0_37 = arith.constant 0 : index
    %94 = vector.load %arg2[%c0_36, %c0_37] : memref<3x8xf32, #tpu.memory_space<vmem>>, vector<1x8xf32>
    %cst_38 = arith.constant 9.99999974E-6 : f32
    %95 = vector.broadcast %cst_38 : f32 to vector<1x8xf32>
    %96 = arith.addf %93, %95 : vector<1x8xf32>
    %97 = math.rsqrt %96 : vector<1x8xf32>
    %98 = arith.mulf %94, %97 : vector<1x8xf32>
    %c0_39 = arith.constant 0 : index
    %c0_40 = arith.constant 0 : index
    %99 = vector.load %arg3[%c0_39, %c0_40] : memref<3x8xf32, #tpu.memory_space<vmem>>, vector<1x8xf32>
    %100 = arith.mulf %87, %98 : vector<1x8xf32>
    %101 = arith.subf %99, %100 : vector<1x8xf32>
    %102 = vector.shape_cast %98 : vector<1x8xf32> to vector<1x8xf32>
    %103 = vector.broadcast %102 : vector<1x8xf32> to vector<2x8xf32>
    %104 = vector.shape_cast %101 : vector<1x8xf32> to vector<1x8xf32>
    %105 = vector.broadcast %104 : vector<1x8xf32> to vector<2x8xf32>
    %106 = arith.select %63, %103, %105 : vector<2x8xi1>, vector<2x8xf32>
    %cst_41 = arith.constant dense<0.000000e+00> : vector<2x128xf32>
    %107 = tpu.matmul %106, %1, %cst_41 {dimension_numbers = #tpu.dot_dimension_numbers<[1], [0], [0], [1], [0, 0, 1, 1], [], []>} : vector<2x8xf32>, vector<8x128xf32>, vector<2x128xf32> -> vector<2x128xf32>
    %108 = vector.extract_strided_slice %107 {offsets = [0, 0], sizes = [1, 128], strides = [1, 1]} : vector<2x128xf32> to vector<1x128xf32>
    %109 = vector.broadcast %108 : vector<1x128xf32> to vector<32x128xf32>
    %110 = arith.mulf %76, %109 : vector<32x128xf32>
    %111 = vector.extract_strided_slice %107 {offsets = [1, 0], sizes = [1, 128], strides = [1, 1]} : vector<2x128xf32> to vector<1x128xf32>
    %112 = vector.broadcast %111 : vector<1x128xf32> to vector<32x128xf32>
    %113 = arith.addf %110, %112 : vector<32x128xf32>
    %cst_42 = arith.constant 0.000000e+00 : f32
    %114 = vector.broadcast %cst_42 : f32 to vector<32x128xf32>
    %115 = arith.cmpf oge, %113, %114 : vector<32x128xf32>
    %cst_43 = arith.constant 0.00999999977 : f32
    %116 = vector.broadcast %cst_43 : f32 to vector<32x128xf32>
    %117 = arith.mulf %116, %113 : vector<32x128xf32>
    %118 = arith.select %115, %113, %117 : vector<32x128xi1>, vector<32x128xf32>
    %c1_i32_44 = arith.constant 1 : i32
    %119 = tpu.dynamic_rotate %118 by %c1_i32_44 dim 0 : vector<32x128xf32>, i32 -> vector<32x128xf32>
    %c31_i32_45 = arith.constant 31 : i32
    %120 = tpu.dynamic_rotate %118 by %c31_i32_45 dim 0 : vector<32x128xf32>, i32 -> vector<32x128xf32>
    %121 = arith.select %60, %119, %120 : vector<32x128xi1>, vector<32x128xf32>
    %122 = arith.select %60, %120, %119 : vector<32x128xi1>, vector<32x128xf32>
    %cst_46 = arith.constant 0.000000e+00 : f32
    %123 = vector.broadcast %cst_46 : f32 to vector<32x128xf32>
    %124 = arith.select %20, %121, %123 : vector<32x128xi1>, vector<32x128xf32>
    %cst_47 = arith.constant 0.000000e+00 : f32
    %125 = vector.broadcast %cst_47 : f32 to vector<32x128xf32>
    %126 = arith.select %38, %122, %125 : vector<32x128xi1>, vector<32x128xf32>
    %127 = tpu.concatenate %124, %118, %126 in 1 : vector<32x128xf32>, vector<32x128xf32>, vector<32x128xf32> -> vector<32x384xf32>
    %c1 = arith.constant 1 : index
    %c0_48 = arith.constant 0 : index
    %c0_49 = arith.constant 0 : index
    %128 = vector.load %arg1[%c1, %c0_48, %c0_49] : memref<3x384x128xf32, #tpu.memory_space<vmem>>, vector<1x384x128xf32>
    %129 = vector.shape_cast %128 : vector<1x384x128xf32> to vector<384x128xf32>
    %cst_50 = arith.constant dense<0.000000e+00> : vector<32x128xf32>
    %130 = tpu.matmul %127, %129, %cst_50 {dimension_numbers = #tpu.dot_dimension_numbers<[1], [0], [0], [1], [0, 0, 1, 1], [], []>} : vector<32x384xf32>, vector<384x128xf32>, vector<32x128xf32> -> vector<32x128xf32>
    %131 = arith.mulf %130, %130 : vector<32x128xf32>
    %132 = tpu.concatenate %130, %131 in 0 : vector<32x128xf32>, vector<32x128xf32> -> vector<64x128xf32>
    %cst_51 = arith.constant dense<0.000000e+00> : vector<64x8xf32>
    %133 = tpu.matmul %132, %0, %cst_51 {dimension_numbers = #tpu.dot_dimension_numbers<[1], [0], [0], [1], [0, 0, 1, 1], [], []>} : vector<64x128xf32>, vector<128x8xf32>, vector<64x8xf32> -> vector<64x8xf32>
    %134 = vector.extract_strided_slice %133 {offsets = [0, 0], sizes = [32, 8], strides = [1, 1]} : vector<64x8xf32> to vector<32x8xf32>
    %cst_52 = arith.constant dense<0.000000e+00> : vector<8xf32>
    %135 = vector.multi_reduction <add>, %134, %cst_52 [0] : vector<32x8xf32> to vector<8xf32>
    %136 = vector.shape_cast %135 : vector<8xf32> to vector<1x8xf32>
    %137 = vector.extract_strided_slice %133 {offsets = [32, 0], sizes = [32, 8], strides = [1, 1]} : vector<64x8xf32> to vector<32x8xf32>
    %cst_53 = arith.constant dense<0.000000e+00> : vector<8xf32>
    %138 = vector.multi_reduction <add>, %137, %cst_53 [0] : vector<32x8xf32> to vector<8xf32>
    %139 = vector.shape_cast %138 : vector<8xf32> to vector<1x8xf32>
    %cst_54 = arith.constant 0.001953125 : f32
    %140 = vector.broadcast %cst_54 : f32 to vector<1x8xf32>
    %141 = arith.mulf %136, %140 : vector<1x8xf32>
    %cst_55 = arith.constant 0.001953125 : f32
    %142 = vector.broadcast %cst_55 : f32 to vector<1x8xf32>
    %143 = arith.mulf %139, %142 : vector<1x8xf32>
    %144 = arith.mulf %141, %141 : vector<1x8xf32>
    %145 = arith.subf %143, %144 : vector<1x8xf32>
    %cst_56 = arith.constant 0.000000e+00 : f32
    %146 = vector.broadcast %cst_56 : f32 to vector<1x8xf32>
    %147 = arith.maximumf %145, %146 : vector<1x8xf32>
    %c1_57 = arith.constant 1 : index
    %c0_58 = arith.constant 0 : index
    %148 = vector.load %arg2[%c1_57, %c0_58] : memref<3x8xf32, #tpu.memory_space<vmem>>, vector<1x8xf32>
    %cst_59 = arith.constant 9.99999974E-6 : f32
    %149 = vector.broadcast %cst_59 : f32 to vector<1x8xf32>
    %150 = arith.addf %147, %149 : vector<1x8xf32>
    %151 = math.rsqrt %150 : vector<1x8xf32>
    %152 = arith.mulf %148, %151 : vector<1x8xf32>
    %c1_60 = arith.constant 1 : index
    %c0_61 = arith.constant 0 : index
    %153 = vector.load %arg3[%c1_60, %c0_61] : memref<3x8xf32, #tpu.memory_space<vmem>>, vector<1x8xf32>
    %154 = arith.mulf %141, %152 : vector<1x8xf32>
    %155 = arith.subf %153, %154 : vector<1x8xf32>
    %156 = vector.shape_cast %152 : vector<1x8xf32> to vector<1x8xf32>
    %157 = vector.broadcast %156 : vector<1x8xf32> to vector<2x8xf32>
    %158 = vector.shape_cast %155 : vector<1x8xf32> to vector<1x8xf32>
    %159 = vector.broadcast %158 : vector<1x8xf32> to vector<2x8xf32>
    %160 = arith.select %63, %157, %159 : vector<2x8xi1>, vector<2x8xf32>
    %cst_62 = arith.constant dense<0.000000e+00> : vector<2x128xf32>
    %161 = tpu.matmul %160, %1, %cst_62 {dimension_numbers = #tpu.dot_dimension_numbers<[1], [0], [0], [1], [0, 0, 1, 1], [], []>} : vector<2x8xf32>, vector<8x128xf32>, vector<2x128xf32> -> vector<2x128xf32>
    %162 = vector.extract_strided_slice %161 {offsets = [0, 0], sizes = [1, 128], strides = [1, 1]} : vector<2x128xf32> to vector<1x128xf32>
    %163 = vector.broadcast %162 : vector<1x128xf32> to vector<32x128xf32>
    %164 = arith.mulf %130, %163 : vector<32x128xf32>
    %165 = vector.extract_strided_slice %161 {offsets = [1, 0], sizes = [1, 128], strides = [1, 1]} : vector<2x128xf32> to vector<1x128xf32>
    %166 = vector.broadcast %165 : vector<1x128xf32> to vector<32x128xf32>
    %167 = arith.addf %164, %166 : vector<32x128xf32>
    %cst_63 = arith.constant 0.000000e+00 : f32
    %168 = vector.broadcast %cst_63 : f32 to vector<32x128xf32>
    %169 = arith.cmpf oge, %167, %168 : vector<32x128xf32>
    %cst_64 = arith.constant 0.00999999977 : f32
    %170 = vector.broadcast %cst_64 : f32 to vector<32x128xf32>
    %171 = arith.mulf %170, %167 : vector<32x128xf32>
    %172 = arith.select %169, %167, %171 : vector<32x128xi1>, vector<32x128xf32>
    %c1_i32_65 = arith.constant 1 : i32
    %173 = tpu.dynamic_rotate %172 by %c1_i32_65 dim 0 : vector<32x128xf32>, i32 -> vector<32x128xf32>
    %c31_i32_66 = arith.constant 31 : i32
    %174 = tpu.dynamic_rotate %172 by %c31_i32_66 dim 0 : vector<32x128xf32>, i32 -> vector<32x128xf32>
    %175 = arith.select %60, %173, %174 : vector<32x128xi1>, vector<32x128xf32>
    %176 = arith.select %60, %174, %173 : vector<32x128xi1>, vector<32x128xf32>
    %cst_67 = arith.constant 0.000000e+00 : f32
    %177 = vector.broadcast %cst_67 : f32 to vector<32x128xf32>
    %178 = arith.select %20, %175, %177 : vector<32x128xi1>, vector<32x128xf32>
    %cst_68 = arith.constant 0.000000e+00 : f32
    %179 = vector.broadcast %cst_68 : f32 to vector<32x128xf32>
    %180 = arith.select %38, %176, %179 : vector<32x128xi1>, vector<32x128xf32>
    %181 = tpu.concatenate %178, %172, %180 in 1 : vector<32x128xf32>, vector<32x128xf32>, vector<32x128xf32> -> vector<32x384xf32>
    %c2 = arith.constant 2 : index
    %c0_69 = arith.constant 0 : index
    %c0_70 = arith.constant 0 : index
    %182 = vector.load %arg1[%c2, %c0_69, %c0_70] : memref<3x384x128xf32, #tpu.memory_space<vmem>>, vector<1x384x128xf32>
    %183 = vector.shape_cast %182 : vector<1x384x128xf32> to vector<384x128xf32>
    %cst_71 = arith.constant dense<0.000000e+00> : vector<32x128xf32>
    %184 = tpu.matmul %181, %183, %cst_71 {dimension_numbers = #tpu.dot_dimension_numbers<[1], [0], [0], [1], [0, 0, 1, 1], [], []>} : vector<32x384xf32>, vector<384x128xf32>, vector<32x128xf32> -> vector<32x128xf32>
    %185 = arith.mulf %184, %184 : vector<32x128xf32>
    %186 = tpu.concatenate %184, %185 in 0 : vector<32x128xf32>, vector<32x128xf32> -> vector<64x128xf32>
    %cst_72 = arith.constant dense<0.000000e+00> : vector<64x8xf32>
    %187 = tpu.matmul %186, %0, %cst_72 {dimension_numbers = #tpu.dot_dimension_numbers<[1], [0], [0], [1], [0, 0, 1, 1], [], []>} : vector<64x128xf32>, vector<128x8xf32>, vector<64x8xf32> -> vector<64x8xf32>
    %188 = vector.extract_strided_slice %187 {offsets = [0, 0], sizes = [32, 8], strides = [1, 1]} : vector<64x8xf32> to vector<32x8xf32>
    %cst_73 = arith.constant dense<0.000000e+00> : vector<8xf32>
    %189 = vector.multi_reduction <add>, %188, %cst_73 [0] : vector<32x8xf32> to vector<8xf32>
    %190 = vector.shape_cast %189 : vector<8xf32> to vector<1x8xf32>
    %191 = vector.extract_strided_slice %187 {offsets = [32, 0], sizes = [32, 8], strides = [1, 1]} : vector<64x8xf32> to vector<32x8xf32>
    %cst_74 = arith.constant dense<0.000000e+00> : vector<8xf32>
    %192 = vector.multi_reduction <add>, %191, %cst_74 [0] : vector<32x8xf32> to vector<8xf32>
    %193 = vector.shape_cast %192 : vector<8xf32> to vector<1x8xf32>
    %cst_75 = arith.constant 0.001953125 : f32
    %194 = vector.broadcast %cst_75 : f32 to vector<1x8xf32>
    %195 = arith.mulf %190, %194 : vector<1x8xf32>
    %cst_76 = arith.constant 0.001953125 : f32
    %196 = vector.broadcast %cst_76 : f32 to vector<1x8xf32>
    %197 = arith.mulf %193, %196 : vector<1x8xf32>
    %198 = arith.mulf %195, %195 : vector<1x8xf32>
    %199 = arith.subf %197, %198 : vector<1x8xf32>
    %cst_77 = arith.constant 0.000000e+00 : f32
    %200 = vector.broadcast %cst_77 : f32 to vector<1x8xf32>
    %201 = arith.maximumf %199, %200 : vector<1x8xf32>
    %c2_78 = arith.constant 2 : index
    %c0_79 = arith.constant 0 : index
    %202 = vector.load %arg2[%c2_78, %c0_79] : memref<3x8xf32, #tpu.memory_space<vmem>>, vector<1x8xf32>
    %cst_80 = arith.constant 9.99999974E-6 : f32
    %203 = vector.broadcast %cst_80 : f32 to vector<1x8xf32>
    %204 = arith.addf %201, %203 : vector<1x8xf32>
    %205 = math.rsqrt %204 : vector<1x8xf32>
    %206 = arith.mulf %202, %205 : vector<1x8xf32>
    %c2_81 = arith.constant 2 : index
    %c0_82 = arith.constant 0 : index
    %207 = vector.load %arg3[%c2_81, %c0_82] : memref<3x8xf32, #tpu.memory_space<vmem>>, vector<1x8xf32>
    %208 = arith.mulf %195, %206 : vector<1x8xf32>
    %209 = arith.subf %207, %208 : vector<1x8xf32>
    %210 = vector.shape_cast %206 : vector<1x8xf32> to vector<1x8xf32>
    %211 = vector.broadcast %210 : vector<1x8xf32> to vector<2x8xf32>
    %212 = vector.shape_cast %209 : vector<1x8xf32> to vector<1x8xf32>
    %213 = vector.broadcast %212 : vector<1x8xf32> to vector<2x8xf32>
    %214 = arith.select %63, %211, %213 : vector<2x8xi1>, vector<2x8xf32>
    %cst_83 = arith.constant dense<0.000000e+00> : vector<2x128xf32>
    %215 = tpu.matmul %214, %1, %cst_83 {dimension_numbers = #tpu.dot_dimension_numbers<[1], [0], [0], [1], [0, 0, 1, 1], [], []>} : vector<2x8xf32>, vector<8x128xf32>, vector<2x128xf32> -> vector<2x128xf32>
    %216 = vector.extract_strided_slice %215 {offsets = [0, 0], sizes = [1, 128], strides = [1, 1]} : vector<2x128xf32> to vector<1x128xf32>
    %217 = vector.broadcast %216 : vector<1x128xf32> to vector<32x128xf32>
    %218 = arith.mulf %184, %217 : vector<32x128xf32>
    %219 = vector.extract_strided_slice %215 {offsets = [1, 0], sizes = [1, 128], strides = [1, 1]} : vector<2x128xf32> to vector<1x128xf32>
    %220 = vector.broadcast %219 : vector<1x128xf32> to vector<32x128xf32>
    %221 = arith.addf %218, %220 : vector<32x128xf32>
    %cst_84 = arith.constant 0.000000e+00 : f32
    %222 = vector.broadcast %cst_84 : f32 to vector<32x128xf32>
    %223 = arith.cmpf oge, %221, %222 : vector<32x128xf32>
    %cst_85 = arith.constant 0.00999999977 : f32
    %224 = vector.broadcast %cst_85 : f32 to vector<32x128xf32>
    %225 = arith.mulf %224, %221 : vector<32x128xf32>
    %226 = arith.select %223, %221, %225 : vector<32x128xi1>, vector<32x128xf32>
    %c0_86 = arith.constant 0 : index
    %c0_87 = arith.constant 0 : index
    %227 = vector.load %arg6[%c0_86, %c0_87] : memref<32x128xf32, #tpu.memory_space<vmem>>, vector<32x128xf32>
    tpu.vector_store %arg6[%c0_86, %c0_87], %226 {strides = array<i32>} : memref<32x128xf32, #tpu.memory_space<vmem>>, vector<32x128xf32>,
    return
  }
}

</mosaic_0001>

<bundles_post_ra>
// kernel: tile.19
= control target key start
LH: loop header
LB: loop body
LE: loop exit
PB: predicated region body
PF: predicated region fallthrough
CT: control target
= control target key end

     0   :  { %vm6_vm0 = vcmask 1043458   ;;  %vm10_vm1 = vcmask 1045508   ;;  %vm14_vm2 = vcmask 1047558   ;;  %s19_s6 = smov 3  ;;  %s22_s7 = smov 12  ;;  %vm16_vm3 = vcmask 64512   ;;  %s736_s0 = inlined_call_operand.vmem [shape: f32[8,16,8], index: 0, kind: input, shape index: {}]   ;;  %s737_s1 = inlined_call_operand.vmem [shape: f32[8,128], index: 1, kind: output, shape index: {}]  }
   0x1   :  { %v348_v0 = vld [vmem:[%s736_s0 + $0xf] ss:$16 sm:%s19_s6]   ;;  %s27_s12 = smov 48  ;;  %s32_s13 = smov 192  ;;  %vm38_vm4 = vcmask 1048512   ;;  %vm60_vm5 = vcmask 982912  }
   0x2   :  { %v349_v1 = vld [vmem:[%s736_s0 + $0xf] ss:$16 sm:%s22_s7]   ;;  %s63_s18 = smov 3  ;;  %s66_s21 = smov 12  ;;  %vm82_vm6 = vcmask 917312   ;;  %vm104_vm7 = vcmask 851712  }
   0x3   :  { %v25_v2 = vsel %vm6_vm0, %v349_v1, %v348_v0  ;;  %v350_v3 = vld [vmem:[%s736_s0 + $0xf] ss:$16 sm:%s27_s12]   ;;  %v356_v6 = vld [vmem:[%s736_s0 + $0xd] ss:$16 sm:%s63_s18]   ;;  %s71_s22 = smov 48  ;;  %s76_s27 = smov 192 }
   0x4   :  { %v351_v4 = vld [vmem:[%s736_s0 + $0xf] ss:$16 sm:%s32_s13]   ;;  %v30_v5 = vsel %vm10_vm1, %v350_v3, %v25_v2  ;;  %v357_v8 = vld [vmem:[%s736_s0 + $0xd] ss:$16 sm:%s66_s21]   ;;  %s423_s28 = smov 120   ;;  %s41_s2 = smov 3 }
   0x5   :  { %v35_v7 = vsel %vm14_vm2, %v351_v4, %v30_v5  ;;  %v358_v9 = vld [vmem:[%s736_s0 + $0xd] ss:$16 sm:%s71_s22]   ;;  %v69_v10 = vsel %vm6_vm0, %v357_v8, %v356_v6  ;;  %s44_s3 = smov 12  ;;  %v352_v13 = vld [vmem:[%s736_s0 + $0xe] ss:$16 sm:%s41_s2]   ;;  %s49_s8 = smov 48 }
   0x6   :  { %36 = vrot.lane.b32.xlu0 %v35_v7, %s423_s28  ;;  %v359_v11 = vld [vmem:[%s736_s0 + $0xd] ss:$16 sm:%s76_s27]   ;;  %v74_v12 = vsel %vm10_vm1, %v358_v9, %v69_v10  ;;  %s54_s9 = smov 192  ;;  %s85_s14 = smov 3  ;;  %vm126_vm8 = vcmask 786112   ;;  %vm148_vm9 = vcmask 720512  }
   0x7   :  { %v353_v14 = vld [vmem:[%s736_s0 + $0xe] ss:$16 sm:%s44_s3]   ;;  %v79_v15 = vsel %vm14_vm2, %v359_v11, %v74_v12  ;;  %s424_s15 = smov 104   ;;  %v360_v20 = vld [vmem:[%s736_s0 + $0xc] ss:$16 sm:%s85_s14]   ;;  %s88_s18 = smov 12 }
   0x8   :  { %v47_v16 = vsel %vm6_vm0, %v353_v14, %v352_v13  ;;  %v354_v17 = vld [vmem:[%s736_s0 + $0xe] ss:$16 sm:%s49_s8]   ;;  %80 = vrot.lane.b32.xlu1 %v79_v15, %s424_s15  ;;  %s93_s19 = smov 48  ;;  %s98_s24 = smov 192  ;;  %vm170_vm10 = vcmask 654912   ;;  %vm192_vm11 = vcmask 589312  }
   0x9   :  { %v355_v18 = vld [vmem:[%s736_s0 + $0xe] ss:$16 sm:%s54_s9]   ;;  %v52_v19 = vsel %vm10_vm1, %v354_v17, %v47_v16  ;;  %v361_v21 = vld [vmem:[%s736_s0 + $0xc] ss:$16 sm:%s88_s18]   ;;  %s151_s27 = smov 3  ;;  %s154_s28 = smov 12 }
   0xa   :  { %v362_v22 = vld [vmem:[%s736_s0 + $0xc] ss:$16 sm:%s93_s19]   ;;  %v57_v23 = vsel %vm14_vm2, %v355_v18, %v52_v19  ;;  %v91_v24 = vsel %vm6_vm0, %v361_v21, %v360_v20  ;;  %v372_v27 = vld [vmem:[%s736_s0 + $0x9] ss:$16 sm:%s151_s27]   ;;  %s159_s4 = smov 48  ;;  %s164_s7 = smov 192 }
   0xb   :  { %v363_v25 = vld [vmem:[%s736_s0 + $0xc] ss:$16 sm:%s98_s24]   ;;  %v96_v26 = vsel %vm10_vm1, %v362_v22, %v91_v24  ;;  %v373_v28 = vld [vmem:[%s736_s0 + $0x9] ss:$16 sm:%s154_s28]   ;;  %s173_s8 = smov 3  ;;  %s425_s9 = smov 112  }
   0xc   :  { %v157_v29 = vsel %vm6_vm0, %v373_v28, %v372_v27  ;;  %v374_v30 = vld [vmem:[%s736_s0 + $0x9] ss:$16 sm:%s159_s4]   ;;  %v101_v31 = vsel %vm14_vm2, %v363_v25, %v96_v26  ;;  %v376_v32 = vld [vmem:[%s736_s0 + $0x8] ss:$16 sm:%s173_s8]   ;;  %s176_s12 = smov 12  ;;  %s181_s13 = smov 48 }
   0xd   :  { %v377_v33 = vld [vmem:[%s736_s0 + $0x8] ss:$16 sm:%s176_s12]   ;;  %s186_s16 = smov 192  ;;  %v162_v34 = vsel %vm10_vm1, %v374_v30, %v157_v29  ;;  %v375_v35 = vld [vmem:[%s736_s0 + $0x9] ss:$16 sm:%s164_s7]   ;;  %s217_s21 = smov 3 }
   0xe   :  { %58 = vrot.lane.b32.xlu0 %v57_v23, %s425_s9  ;;  %v179_v36 = vsel %vm6_vm0, %v377_v33, %v376_v32  ;;  %v378_v37 = vld [vmem:[%s736_s0 + $0x8] ss:$16 sm:%s181_s13]   ;;  %s220_s22 = smov 12  ;;  %s426_s23 = smov 96   ;;  %v167_v40 = vsel %vm14_vm2, %v375_v35, %v162_v34  ;;  %vm214_vm12 = vcmask 523712   ;;  %vm236_vm13 = vcmask 458112  }
   0xf   :  { %s225_s24 = smov 48  ;;  %v384_v38 = vld [vmem:[%s736_s0 + $0x6] ss:$16 sm:%s217_s21]   ;;  %s239_s29 = smov 3  ;;  %v184_v41 = vsel %vm10_vm1, %v378_v37, %v179_v36  ;;  %v379_v42 = vld [vmem:[%s736_s0 + $0x8] ss:$16 sm:%s186_s16]  }
  0x10   :  { %102 = vrot.lane.b32.xlu1 %v101_v31, %s426_s23  ;;  %v385_v39 = vld [vmem:[%s736_s0 + $0x6] ss:$16 sm:%s220_s22]   ;;  %s230_s3 = smov 192  ;;  %s242_s4 = smov 12  ;;  %v189_v47 = vsel %vm14_vm2, %v379_v42, %v184_v41  ;;  %vm258_vm14 = vcmask 392512   ;;  %vm280_vm15 = vcmask 326912  }
  0x11   :  { %v386_v43 = vld [vmem:[%s736_s0 + $0x6] ss:$16 sm:%s225_s24]   ;;  %s247_s7 = smov 48  ;;  %v223_v44 = vsel %vm6_vm0, %v385_v39, %v384_v38  ;;  %v388_v45 = vld [vmem:[%s736_s0 + $0x5] ss:$16 sm:%s239_s29]   ;;  %s107_s12 = smov 3 }
  0x12   :  { %v389_v46 = vld [vmem:[%s736_s0 + $0x5] ss:$16 sm:%s242_s4]   ;;  %s110_s13 = smov 12  ;;  %s427_s14 = smov 72   ;;  %v387_v48 = vld [vmem:[%s736_s0 + $0x6] ss:$16 sm:%s230_s3]   ;;  %v228_v52 = vsel %vm10_vm1, %v386_v43, %v223_v44 }
  0x13   :  { %v364_v49 = vld [vmem:[%s736_s0 + $0xb] ss:$16 sm:%s107_s12]   ;;  %s115_s19 = smov 48  ;;  %s120_s20 = smov 192  ;;  %v245_v53 = vsel %vm6_vm0, %v389_v46, %v388_v45  ;;  %v390_v54 = vld [vmem:[%s736_s0 + $0x5] ss:$16 sm:%s247_s7]   ;;  %v233_v61 = vsel %vm14_vm2, %v387_v48, %v228_v52 }
  0x14   :  { %s252_s21 = smov 192  ;;  %v365_v50 = vld [vmem:[%s736_s0 + $0xb] ss:$16 sm:%s110_s13]   ;;  %s283_s26 = smov 3  ;;  %v250_v62 = vsel %vm10_vm1, %v390_v54, %v245_v53 }
  0x15   :  { %v366_v51 = vld [vmem:[%s736_s0 + $0xb] ss:$16 sm:%s115_s19]   ;;  %v113_v55 = vsel %vm6_vm0, %v365_v50, %v364_v49  ;;  %s286_s2 = smov 12  ;;  %s428_s3 = smov 64   ;;  %v396_v59 = vld [vmem:[%s736_s0 + $0x3] ss:$16 sm:%s283_s26]  }
  0x16   :  { %168 = vrot.lane.b32.xlu0 %v167_v40, %s427_s14  ;;  %v367_v56 = vld [vmem:[%s736_s0 + $0xb] ss:$16 sm:%s120_s20]   ;;  %v118_v57 = vsel %vm10_vm1, %v366_v51, %v113_v55  ;;  %s291_s4 = smov 48  ;;  %s305_s9 = smov 3 }
  0x17   :  { %v123_v58 = vsel %vm14_vm2, %v367_v56, %v118_v57  ;;  %v397_v60 = vld [vmem:[%s736_s0 + $0x3] ss:$16 sm:%s286_s2]   ;;  %s308_s10 = smov 12  ;;  %v391_v63 = vld [vmem:[%s736_s0 + $0x5] ss:$16 sm:%s252_s21]   ;;  %s429_s13 = smov 88  }
  0x18   :  { %190 = vrot.lane.b32.xlu1 %v189_v47, %s428_s3  ;;  %124 = vrot.lane.b32.xlu2 %v123_v58, %s429_s13  ;;  %s296_s14 = smov 192  ;;  %s313_s15 = smov 48  ;;  %v398_v0 = vld [vmem:[%s736_s0 + $0x3] ss:$16 sm:%s291_s4]   ;;  %v289_v2 = vsel %vm6_vm0, %v397_v60, %v396_v59  ;;  %v255_v5 = vsel %vm14_vm2, %v391_v63, %v250_v62 }
  0x19   :  { %v400_v1 = vld [vmem:[%s736_s0 + $0x2] ss:$16 sm:%s305_s9]   ;;  %s129_s20 = smov 3  ;;  %s132_s25 = smov 12  ;;  %v399_v6 = vld [vmem:[%s736_s0 + $0x3] ss:$16 sm:%s296_s14]   ;;  %v294_v12 = vsel %vm10_vm1, %v398_v0, %v289_v2 }
  0x1a   :  { %v401_v3 = vld [vmem:[%s736_s0 + $0x2] ss:$16 sm:%s308_s10]   ;;  %v368_v4 = vld [vmem:[%s736_s0 + $0xa] ss:$16 sm:%s129_s20]   ;;  %s137_s26 = smov 48  ;;  %s430_s27 = smov 48   ;;  %v299_v20 = vsel %vm14_vm2, %v399_v6, %v294_v12 }
  0x1b   :  { %v402_v7 = vld [vmem:[%s736_s0 + $0x2] ss:$16 sm:%s313_s15]   ;;  %s318_s3 = smov 192  ;;  %v369_v8 = vld [vmem:[%s736_s0 + $0xa] ss:$16 sm:%s132_s25]   ;;  %s142_s6 = smov 192  ;;  %v311_v13 = vsel %vm6_vm0, %v401_v3, %v400_v1 }
  0x1c   :  { %v135_v9 = vsel %vm6_vm0, %v369_v8, %v368_v4  ;;  %v370_v10 = vld [vmem:[%s736_s0 + $0xa] ss:$16 sm:%s137_s26]   ;;  %s195_s11 = smov 3  ;;  %s198_s12 = smov 12  ;;  %v316_v21 = vsel %vm10_vm1, %v402_v7, %v311_v13  ;;  %v403_v22 = vld [vmem:[%s736_s0 + $0x2] ss:$16 sm:%s318_s3]  }
  0x1d   :  { %v371_v11 = vld [vmem:[%s736_s0 + $0xa] ss:$16 sm:%s142_s6]   ;;  %v140_v14 = vsel %vm10_vm1, %v370_v10, %v135_v9  ;;  %v380_v15 = vld [vmem:[%s736_s0 + $0x7] ss:$16 sm:%s195_s11]   ;;  %s203_s17 = smov 48  ;;  %s431_s18 = smov 40   ;;  %v321_v25 = vsel %vm14_vm2, %v403_v22, %v316_v21 }
  0x1e   :  { %234 = vrot.lane.b32.xlu0 %v233_v61, %s430_s27  ;;  %v381_v16 = vld [vmem:[%s736_s0 + $0x7] ss:$16 sm:%s198_s12]   ;;  %v145_v17 = vsel %vm14_vm2, %v371_v11, %v140_v14  ;;  %s208_s21 = smov 192  ;;  %s432_s24 = smov 80  }
  0x1f   :  { %v201_v18 = vsel %vm6_vm0, %v381_v16, %v380_v15  ;;  %v382_v19 = vld [vmem:[%s736_s0 + $0x7] ss:$16 sm:%s203_s17]   ;;  %s261_s25 = smov 3  ;;  %s264_s26 = smov 12 }
  0x20   :  { %256 = vrot.lane.b32.xlu1 %v255_v5, %s431_s18  ;;  %146 = vrot.lane.b32.xlu2 %v145_v17, %s432_s24  ;;  %v206_v23 = vsel %vm10_vm1, %v382_v19, %v201_v18  ;;  %v383_v24 = vld [vmem:[%s736_s0 + $0x7] ss:$16 sm:%s208_s21]   ;;  %s433_s29 = smov 24   ;;  %s269_s5 = smov 48 }
  0x21   :  { %v392_v26 = vld [vmem:[%s736_s0 + $0x4] ss:$16 sm:%s261_s25]   ;;  %v211_v28 = vsel %vm14_vm2, %v383_v24, %v206_v23  ;;  %s434_s6 = smov 16   ;;  %s274_s9 = smov 192 }
  0x22   :  { %v393_v27 = vld [vmem:[%s736_s0 + $0x4] ss:$16 sm:%s264_s26]   ;;  %s435_s10 = smov 56   ;;  %s327_s11 = smov 3 }
  0x23   :  { %v267_v29 = vsel %vm6_vm0, %v393_v27, %v392_v26  ;;  %v394_v30 = vld [vmem:[%s736_s0 + $0x4] ss:$16 sm:%s269_s5]   ;;  %s330_s12 = smov 12  ;;  %v404_v33 = vld [vmem:[%s736_s0 + $0x1] ss:$16 sm:%s327_s11]   ;;  %s335_s19 = smov 48 }
  0x24   :  { %v272_v31 = vsel %vm10_vm1, %v394_v30, %v267_v29  ;;  %v395_v32 = vld [vmem:[%s736_s0 + $0x4] ss:$16 sm:%s274_s9]   ;;  %v405_v34 = vld [vmem:[%s736_s0 + $0x1] ss:$16 sm:%s330_s12]   ;;  %s340_s22 = smov 192  ;;  %s436_s23 = smov 32  }
  0x25   :  { %v277_v35 = vsel %vm14_vm2, %v395_v32, %v272_v31  ;;  %v333_v36 = vsel %vm6_vm0, %v405_v34, %v404_v33  ;;  %v406_v37 = vld [vmem:[%s736_s0 + $0x1] ss:$16 sm:%s335_s19]   ;;  %s437_s26 = smov 8   ;;  %s2_s27 = smov 3 }
  0x26   :  { %300 = vrot.lane.b32.xlu0 %v299_v20, %s433_s29  ;;  %v338_v38 = vsel %vm10_vm1, %v406_v37, %v333_v36  ;;  %v407_v39 = vld [vmem:[%s736_s0 + $0x1] ss:$16 sm:%s340_s22]   ;;  %s4_s28 = smov 12  ;;  %s8_s29 = smov 48 }
  0x27   :  { %v343_v40 = vsel %vm14_vm2, %v407_v39, %v338_v38  ;;  %s12_s30 = smov 192  ;;  %v3_v41 = vld [vmem:[%s736_s0] ss:$16 sm:%s2_s27]  }
  0x28   :  { %322 = vrot.lane.b32.xlu1 %v321_v25, %s434_s6  ;;  %212 = vrot.lane.b32.xlu2 %v211_v28, %s435_s10  ;;  %v5_v42 = vld [vmem:[%s736_s0] ss:$16 sm:%s4_s28]  }
  0x29   :  { %v7_v43 = vsel %vm6_vm0, %v5_v42, %v3_v41  ;;  %v9_v44 = vld [vmem:[%s736_s0] ss:$16 sm:%s8_s29]   ;;  %vm302_vm0 = vcmask 261312  }
  0x2a   :  { %v11_v45 = vsel %vm10_vm1, %v9_v44, %v7_v43  ;;  %v13_v46 = vld [vmem:[%s736_s0] ss:$16 sm:%s12_s30]   ;;  %vm324_vm1 = vcmask 195712  }
  0x2b   :  { %v15_v47 = vsel %vm14_vm2, %v13_v46, %v11_v45  ;;  %vm346_vm2 = vcmask 130112  }
  0x2c   :  { %17 = vst.msk [vmem:[%s737_s1] sm:$0xff] %vm16_vm3, %v15_v47  }
  0x30   :  { %278 = vrot.lane.b32.xlu2 %v277_v35, %s436_s23 }
  0x38   :  { %344 = vrot.lane.b32.xlu2 %v343_v40, %s437_s26 }
  0x72   :  { %v125_v48 = vpop.permute.xlu2 %124  }
  0x78   :  { %v37_v49 = vpop.permute.xlu0 %36  }
  0x79   :  { %39 = vst.msk [vmem:[%s737_s1] sm:$0xff] %vm38_vm4, %v37_v49  }
  0x7a   :  { %v81_v50 = vpop.permute.xlu1 %80   ;;  %v147_v51 = vpop.permute.xlu2 %146  }
  0x80   :  { %v59_v52 = vpop.permute.xlu0 %58  }
  0x81   :  { %61 = vst.msk [vmem:[%s737_s1] sm:$0xff] %vm60_vm5, %v59_v52  }
  0x82   :  { %83 = vst.msk [vmem:[%s737_s1] sm:$0xff] %vm82_vm6, %v81_v50   ;;  %v103_v53 = vpop.permute.xlu1 %102   ;;  %v213_v54 = vpop.permute.xlu2 %212  }
  0x83   :  { %105 = vst.msk [vmem:[%s737_s1] sm:$0xff] %vm104_vm7, %v103_v53  }
  0x84   :  { %127 = vst.msk [vmem:[%s737_s1] sm:$0xff] %vm126_vm8, %v125_v48  }
  0x85   :  { %149 = vst.msk [vmem:[%s737_s1] sm:$0xff] %vm148_vm9, %v147_v51  }
  0x88   :  { %v169_v55 = vpop.permute.xlu0 %168  }
  0x89   :  { %171 = vst.msk [vmem:[%s737_s1] sm:$0xff] %vm170_vm10, %v169_v55  }
  0x8a   :  { %v191_v56 = vpop.permute.xlu1 %190   ;;  %v279_v57 = vpop.permute.xlu2 %278  }
  0x8b   :  { %193 = vst.msk [vmem:[%s737_s1] sm:$0xff] %vm192_vm11, %v191_v56  }
  0x8c   :  { %215 = vst.msk [vmem:[%s737_s1] sm:$0xff] %vm214_vm12, %v213_v54  }
  0x90   :  { %v235_v58 = vpop.permute.xlu0 %234  }
  0x91   :  { %237 = vst.msk [vmem:[%s737_s1] sm:$0xff] %vm236_vm13, %v235_v58  }
  0x92   :  { %v257_v59 = vpop.permute.xlu1 %256   ;;  %v345_v60 = vpop.permute.xlu2 %344  }
  0x93   :  { %259 = vst.msk [vmem:[%s737_s1] sm:$0xff] %vm258_vm14, %v257_v59  }
  0x94   :  { %281 = vst.msk [vmem:[%s737_s1] sm:$0xff] %vm280_vm15, %v279_v57  }
  0x98   :  { %v301_v61 = vpop.permute.xlu0 %300  }
  0x99   :  { %303 = vst.msk [vmem:[%s737_s1] sm:$0xff] %vm302_vm0, %v301_v61  }
  0x9a   :  { %v323_v62 = vpop.permute.xlu1 %322  }
  0x9b   :  { %325 = vst.msk [vmem:[%s737_s1] sm:$0xff] %vm324_vm1, %v323_v62  }
  0x9c   :  { %347 = vst.msk [vmem:[%s737_s1] sm:$0xff] %vm346_vm2, %v345_v60  }

// kernel: triple_conv_forward.1
= control target key start
LH: loop header
LB: loop body
LE: loop exit
PB: predicated region body
PF: predicated region fallthrough
CT: control target
= control target key end

     0   :  { %v40_v9 = vlaneseq  ;;  %s2348_s1 = inlined_call_operand.vmem [shape: f32[3,384,128], index: 1, kind: input, shape index: {}]   ;;  %s2349_s0 = inlined_call_operand.vmem [shape: f32[32,128], index: 0, kind: input, shape index: {}]   ;;  %s2350_s4 = inlined_call_operand.vmem [shape: f32[128,8], index: 4, kind: input, shape index: {}]   ;;  %s2351_s5 = inlined_call_operand.vmem [shape: f32[8,128], index: 5, kind: input, shape index: {}]   ;;  %s2352_s2 = inlined_call_operand.vmem [shape: f32[3,8], index: 2, kind: input, shape index: {}]   ;;  %s2353_s3 = inlined_call_operand.vmem [shape: f32[3,8], index: 3, kind: input, shape index: {}]   ;;  %s2354_s6 = inlined_call_operand.vmem [shape: f32[32,128], index: 6, kind: output, shape index: {}]  }
   0x1   :  { %v255_v0 = vld [vmem:[%s2348_s1 + $0x178] sm:$0xff]  ;;  %v254_v1 = vld [vmem:[%s2348_s1 + $0x170] sm:$0xff]  ;;  %v253_v5 = vld [vmem:[%s2348_s1 + $0x168] sm:$0xff] }
   0x2   :  { %v223_v2 = vld [vmem:[%s2348_s1 + $0x78] sm:$0xff]  ;;  %314 = vmatpush.msra.mxu2 %v255_v0  ;;  %v222_v4 = vld [vmem:[%s2348_s1 + $0x70] sm:$0xff]  ;;  %v221_v7 = vld [vmem:[%s2348_s1 + $0x68] sm:$0xff]  ;;  %v1357_v16 = vshrl.u32 %v40_v9, 7 }
   0x3   :  { %256 = vmatpush.msra.mxu0 %v223_v2  ;;  %v239_v3 = vld [vmem:[%s2348_s1 + $0xf8] sm:$0xff]  ;;  %v238_v6 = vld [vmem:[%s2348_s1 + $0xf0] sm:$0xff]  ;;  %v237_v8 = vld [vmem:[%s2348_s1 + $0xe8] sm:$0xff] }
   0x4   :  { %285 = vmatpush.msra.mxu1 %v239_v3  ;;  %315 = vmatpush.msra.mxu2 %v254_v1  ;;  %v252_v10 = vld [vmem:[%s2348_s1 + $0x160] sm:$0xff]  ;;  %v251_v13 = vld [vmem:[%s2348_s1 + $0x158] sm:$0xff]  ;;  %v250_v17 = vld [vmem:[%s2348_s1 + $0x150] sm:$0xff]  ;;  %v1369_v20 = vadd.s32 8, %v1357_v16  ;;  %v110_v27 = vadd.s32 32, %v1357_v16  ;;  %v1401_v32 = vadd.s32 24, %v1357_v16 }
   0x5   :  { %257 = vmatpush.msra.mxu0 %v222_v4  ;;  %v220_v11 = vld [vmem:[%s2348_s1 + $0x60] sm:$0xff]  ;;  %v219_v14 = vld [vmem:[%s2348_s1 + $0x58] sm:$0xff]  ;;  %v218_v18 = vld [vmem:[%s2348_s1 + $0x50] sm:$0xff]  ;;  %v1413_v38 = vadd.s32 16, %v1357_v16  ;;  %v101_v42 = vrot.slane %v1357_v16, 7  ;;  %vm105_vm0 = vcmp.lt.s32.totalorder %v1357_v16, 1 }
   0x6   :  { %286 = vmatpush.msra.mxu1 %v238_v6  ;;  %316 = vmatpush.msra.mxu2 %v253_v5  ;;  %v236_v12 = vld [vmem:[%s2348_s1 + $0xe0] sm:$0xff]  ;;  %v235_v15 = vld [vmem:[%s2348_s1 + $0xd8] sm:$0xff]  ;;  %v234_v19 = vld [vmem:[%s2348_s1 + $0xd0] sm:$0xff]  ;;  %v111_v28 = vadd.s32 32, %v1369_v20  ;;  %v1108_v36 = vadd.s32 4294967295, %v110_v27  ;;  %v104_v43 = vrot.slane %v1401_v32, 7 }
   0x7   :  { %258 = vmatpush.msra.mxu0 %v221_v7  ;;  %v249_v21 = vld [vmem:[%s2348_s1 + $0x148] sm:$0xff]  ;;  %v248_v24 = vld [vmem:[%s2348_s1 + $0x140] sm:$0xff]  ;;  %v247_v29 = vld [vmem:[%s2348_s1 + $0x138] sm:$0xff]  ;;  %v112_v52 = vadd.s32 32, %v1413_v38  ;;  %vm187_vm1 = vcmp.lt.s32.totalorder %v1357_v16, 7 }
   0x8   :  { %287 = vmatpush.msra.mxu1 %v237_v8  ;;  %317 = vmatpush.msra.mxu2 %v252_v10  ;;  %v217_v22 = vld [vmem:[%s2348_s1 + $0x48] sm:$0xff]  ;;  %v216_v25 = vld [vmem:[%s2348_s1 + $0x40] sm:$0xff]  ;;  %v215_v30 = vld [vmem:[%s2348_s1 + $0x38] sm:$0xff]  ;;  %v1109_v37 = vadd.s32 4294967295, %v111_v28  ;;  %v122_v50 = vand.u32 31, %v1108_v36  ;;  %v109_v60 = vsel %vm105_vm0, %v104_v43, %v101_v42  ;;  %v49_v8 = vand.u32 15, %v1357_v16 }
   0x9   :  { %259 = vmatpush.msra.mxu0 %v220_v11  ;;  %v233_v23 = vld [vmem:[%s2348_s1 + $0xc8] sm:$0xff]  ;;  %v232_v26 = vld [vmem:[%s2348_s1 + $0xc0] sm:$0xff]  ;;  %v231_v31 = vld [vmem:[%s2348_s1 + $0xb8] sm:$0xff]  ;;  %v1110_v0 = vadd.s32 4294967295, %v112_v52  ;;  %v102_v10 = vrot.slane %v1369_v20, 7  ;;  %v103_v36 = vrot.slane %v1413_v38, 7 }
   0xa   :  { %288 = vmatpush.msra.mxu1 %v236_v12  ;;  %318 = vmatpush.msra.mxu2 %v251_v13  ;;  %v246_v33 = vld [vmem:[%s2348_s1 + $0x130] sm:$0xff]  ;;  %v245_v39 = vld [vmem:[%s2348_s1 + $0x128] sm:$0xff]  ;;  %v1429_v44 = vld [vmem:[%s2349_s0] sm:$0xff]  ;;  %v1451_v51 = vand.u32 31, %v1109_v37  ;;  %vm1498_vm4 = vcmp.eq.s32.totalorder %v109_v60, %v122_v50  ;;  %vm1555_vm6 = vcmp.ne.s32.totalorder %v49_v8, 0 }
   0xb   :  { %260 = vmatpush.msra.mxu0 %v219_v14  ;;  %v214_v34 = vld [vmem:[%s2348_s1 + $0x30] sm:$0xff]  ;;  %v213_v40 = vld [vmem:[%s2348_s1 + $0x28] sm:$0xff]  ;;  %v1439_v46 = vld [vmem:[%s2349_s0 + $0x18] sm:$0xff]  ;;  %v175_v55 = vrot.slane %v1429_v44, 7  ;;  %v183_v57 = vrot.slane %v1429_v44, 1  ;;  %v108_v27 = vsel %vm105_vm0, %v101_v42, %v102_v10  ;;  %v107_v52 = vsel %vm105_vm0, %v102_v10, %v103_v36 }
   0xc   :  { %289 = vmatpush.msra.mxu1 %v235_v15  ;;  %319 = vmatpush.msra.mxu2 %v250_v17  ;;  %v230_v35 = vld [vmem:[%s2348_s1 + $0xb0] sm:$0xff]  ;;  %v229_v41 = vld [vmem:[%s2348_s1 + $0xa8] sm:$0xff]  ;;  %v244_v47 = vld [vmem:[%s2348_s1 + $0x120] sm:$0xff]  ;;  %v178_v56 = vrot.slane %v1439_v46, 7  ;;  %vm147_vm2 = vcmp.ne.s32.totalorder %v1451_v51, 0  ;;  %vm151_vm3 = vcmp.lt.s32.totalorder %v1451_v51, 0 }
   0xd   :  { %261 = vmatpush.msra.mxu0 %v218_v18  ;;  %v1434_v45 = vld [vmem:[%s2349_s0 + $0x8] sm:$0xff]  ;;  %v212_v48 = vld [vmem:[%s2348_s1 + $0x20] sm:$0xff]  ;;  %v243_v53 = vld [vmem:[%s2348_s1 + $0x118] sm:$0xff]  ;;  %v159_v11 = vadd.s32 32, %v1451_v51 }
   0xe   :  { %290 = vmatpush.msra.mxu1 %v234_v19  ;;  %320 = vmatpush.msra.mxu2 %v249_v21  ;;  %v228_v49 = vld [vmem:[%s2348_s1 + $0xa0] sm:$0xff]  ;;  %v211_v54 = vld [vmem:[%s2348_s1 + $0x18] sm:$0xff]  ;;  %v184_v58 = vrot.slane %v1434_v45, 1  ;;  %v242_v61 = vld [vmem:[%s2348_s1 + $0x110] sm:$0xff]  ;;  %v182_v5 = vsel %vm105_vm0, %v178_v56, %v175_v55  ;;  %v136_v21 = vand.u32 31, %v1110_v0 }
   0xf   :  { %262 = vmatpush.msra.mxu0 %v217_v22  ;;  %v227_v59 = vld [vmem:[%s2348_s1 + $0x98] sm:$0xff]  ;;  %v210_v62 = vld [vmem:[%s2348_s1 + $0x10] sm:$0xff]  ;;  %v241_v3 = vld [vmem:[%s2348_s1 + $0x108] sm:$0xff]  ;;  %v113_v22 = vadd.s32 32, %v1401_v32 }
  0x10   :  { %291 = vmatpush.msra.mxu1 %v233_v23  ;;  %321 = vmatpush.msra.mxu2 %v248_v24  ;;  %v226_v63 = vld [vmem:[%s2348_s1 + $0x90] sm:$0xff]  ;;  %v1488_v1 = vld [vmem:[%s2350_s4 + $0x78] sm:$0xff]  ;;  %v190_v6 = vsel %vm187_vm1, %v183_v57, %v184_v58  ;;  %v209_v7 = vld [vmem:[%s2348_s1 + $0x8] sm:$0xff]  ;;  %vm148_vm7 = vcmp.ne.s32.totalorder %v136_v21, 0  ;;  %vm152_vm8 = vcmp.lt.s32.totalorder %v136_v21, 0  ;;  %v160_v37 = vadd.s32 32, %v136_v21 }
  0x11   :  { %263 = vmatpush.msra.mxu0 %v216_v25  ;;  %v1493_v2 = vld [vmem:[%s2350_s4 + $0x70] sm:$0xff]  ;;  %347 = vmatpush.msra.mxu3 %v1488_v1  ;;  %v225_v9 = vld [vmem:[%s2348_s1 + $0x88] sm:$0xff]  ;;  %v240_v14 = vld [vmem:[%s2348_s1 + $0x100] sm:$0xff]  ;;  %v196_v18 = vsel %vm1498_vm4, %v190_v6, %v182_v5  ;;  %v192_v24 = vsel %vm1498_vm4, %v182_v5, %v190_v6  ;;  %v176_v25 = vrot.slane %v1434_v45, 7  ;;  %v106_v6 = vsel %vm105_vm0, %v103_v36, %v104_v43 }
  0x12   :  { %292 = vmatpush.msra.mxu1 %v232_v26  ;;  %322 = vmatpush.msra.mxu2 %v247_v29  ;;  %v1527_v12 = vld [vmem:[%s2349_s0 + $0x10] sm:$0xff]  ;;  %v1532_v13 = vld [vmem:[%s2350_s4 + $0x68] sm:$0xff]  ;;  %v208_v15 = vld [vmem:[%s2348_s1] sm:$0xff] }
  0x13   :  { %264 = vmatpush.msra.mxu0 %v215_v30  ;;  %vm1544_vm5 = vmand %vm151_vm3, %vm147_vm2  ;;  %348 = vmatpush.msra.mxu3 %v1493_v2  ;;  %v224_v19 = vld [vmem:[%s2348_s1 + $0x80] sm:$0xff]  ;;  %v185_v26 = vrot.slane %v1527_v12, 1  ;;  %v56_v30 = vand.u32 15, %v1369_v20  ;;  %v177_v50 = vrot.slane %v1527_v12, 7  ;;  %v1696_v43 = vld [vmem:[%s2350_s4 + $0x18] sm:$0xff] }
  0x14   :  { %293 = vmatpush.msra.mxu1 %v231_v31  ;;  %323 = vmatpush.msra.mxu2 %v246_v33  ;;  %v163_v28 = vsel %vm1544_vm5, %v159_v11, %v1451_v51  ;;  %v1574_v29 = vld [vmem:[%s2350_s4 + $0x60] sm:$0xff]  ;;  %v1111_v31 = vadd.s32 4294967295, %v113_v22  ;;  %v1583_v33 = vld [vmem:[%s2350_s4 + $0x58] sm:$0xff]  ;;  %vm1604_vm10 = vmand %vm152_vm8, %vm148_vm7  ;;  %v186_v51 = vrot.slane %v1439_v46, 1  ;;  %vm388_vm7 = vcmask 64512  }
  0x15   :  { %265 = vmatpush.msra.mxu0 %v214_v34  ;;  %349 = vmatpush.msra.mxu3 %v1532_v13  ;;  %vm1585_vm9 = vcmp.eq.s32.totalorder %v108_v27, %v163_v28  ;;  %v189_v20 = vsel %vm187_vm1, %v184_v58, %v185_v26  ;;  %vm1609_vm11 = vcmp.ne.s32.totalorder %v56_v30, 15  ;;  %v1686_v8 = vld [vmem:[%s2350_s4 + $0x20] sm:$0xff]  ;;  %v179_v11 = vsel %vm105_vm0, %v177_v50, %v178_v56  ;;  %v1732_v56 = vld [vmem:[%s2350_s4 + $0x8] sm:$0xff] }
  0x16   :  { %294 = vmatpush.msra.mxu1 %v230_v35  ;;  %324 = vmatpush.msra.mxu2 %v245_v39  ;;  %v181_v35 = vsel %vm105_vm0, %v175_v55, %v176_v25  ;;  %v1602_v39 = vld [vmem:[%s2350_s4 + $0x50] sm:$0xff]  ;;  %v1641_v55 = vld [vmem:[%s2350_s4 + $0x38] sm:$0xff]  ;;  %v188_v60 = vsel %vm187_vm1, %v185_v26, %v186_v51 }
  0x17   :  { %266 = vmatpush.msra.mxu0 %v213_v40  ;;  %350 = vmatpush.msra.mxu3 %v1574_v29  ;;  %v197_v42 = vsel %vm1585_vm9, %v189_v20, %v181_v35 }
  0x18   :  { %295 = vmatpush.msra.mxu1 %v229_v41  ;;  %325 = vmatpush.msra.mxu2 %v244_v47  ;;  %v143_v47 = vand.u32 31, %v1111_v31 }
  0x19   :  { %267 = vmatpush.msra.mxu0 %v212_v48  ;;  %351 = vmatpush.msra.mxu3 %v1583_v33  ;;  %v1618_v48 = vld [vmem:[%s2350_s4 + $0x48] sm:$0xff] }
  0x1a   :  { %296 = vmatpush.msra.mxu1 %v228_v49  ;;  %326 = vmatpush.msra.mxu2 %v243_v53  ;;  %v193_v49 = vsel %vm1585_vm9, %v181_v35, %v189_v20  ;;  %v164_v53 = vsel %vm1604_vm10, %v160_v37, %v136_v21  ;;  %vm149_vm12 = vcmp.ne.s32.totalorder %v143_v47, 0  ;;  %vm153_vm13 = vcmp.lt.s32.totalorder %v143_v47, 0 }
  0x1b   :  { %268 = vmatpush.msra.mxu0 %v211_v54  ;;  %352 = vmatpush.msra.mxu3 %v1602_v39  ;;  %v1632_v54 = vld [vmem:[%s2350_s4 + $0x40] sm:$0xff]  ;;  %vm1643_vm14 = vcmp.eq.s32.totalorder %v107_v52, %v164_v53  ;;  %vm1658_vm15 = vmand %vm153_vm13, %vm149_vm12  ;;  %vm170_vm13 = vcmp.eq.s32.totalorder %v1357_v16, 0 }
  0x1c   :  { %297 = vmatpush.msra.mxu1 %v227_v59  ;;  %327 = vmatpush.msra.mxu2 %v242_v61  ;;  %v180_v59 = vsel %vm105_vm0, %v176_v25, %v177_v50  ;;  %v63_v61 = vand.u32 15, %v1413_v38  ;;  %v1668_v38 = vld [vmem:[%s2350_s4 + $0x28] sm:$0xff] }
  0x1d   :  { %269 = vmatpush.msra.mxu0 %v210_v62  ;;  %353 = vmatpush.msra.mxu3 %v1618_v48  ;;  %v1656_v62 = vld [vmem:[%s2350_s4 + $0x30] sm:$0xff]  ;;  %v198_v0 = vsel %vm1643_vm14, %v188_v60, %v180_v59  ;;  %v194_v5 = vsel %vm1643_vm14, %v180_v59, %v188_v60 }
  0x1e   :  { %298 = vmatpush.msra.mxu1 %v226_v63  ;;  %328 = vmatpush.msra.mxu2 %v241_v3  ;;  %vm1670_vm2 = vcmp.ne.s32.totalorder %v63_v61, 0 }
  0x1f   :  { %270 = vmatpush.msra.mxu0 %v209_v7  ;;  %354 = vmatpush.msra.mxu3 %v1632_v54 }
  0x20   :  { %299 = vmatpush.msra.mxu1 %v225_v9  ;;  %329 = vmatpush.msra.mxu2 %v240_v14  ;;  %v70_v9 = vand.u32 15, %v1401_v32 }
  0x21   :  { %271 = vmatpush.msra.mxu0 %v208_v15  ;;  %330 = vmatmul.f32.vlgmr.msra.gmra.mxu2 %v196_v18 }
  0x22   :  { %300 = vmatpush.msra.mxu1 %v224_v19  ;;  %1112 = vmatmul.msk.f32.vlgmr.msra.gmra.mxu0 %vm1555_vm6, %v192_v24  ;;  %vm1712_vm5 = vcmp.ne.s32.totalorder %v70_v9, 15 }
  0x23   :  { %301 = vmatmul.f32.vlgmr.msra.gmra.mxu1 %v1429_v44  ;;  %355 = vmatpush.msra.mxu3 %v1641_v55  ;;  %v1726_v44 = vld [vmem:[%s2350_s4 + $0x10] sm:$0xff] }
  0x25   :  { %356 = vmatpush.msra.mxu3 %v1656_v62 }
  0x27   :  { %357 = vmatpush.msra.mxu3 %v1668_v38 }
  0x29   :  { %1114 = vmatmul.msk.f32.gmra.mxu2 %vm1609_vm11, %v197_v42  ;;  %358 = vmatpush.msra.mxu3 %v1686_v8 }
  0x2a   :  { %275 = vmatmul.f32.gmra.mxu0 %v193_v49 }
  0x2b   :  { %304 = vmatmul.f32.gmra.mxu1 %v1434_v45  ;;  %v161_v45 = vadd.s32 32, %v143_v47  ;;  %359 = vmatpush.msra.mxu3 %v1696_v43 }
  0x2d   :  { %v165_v7 = vsel %vm1658_vm15, %v161_v45, %v143_v47  ;;  %360 = vmatpush.msra.mxu3 %v1726_v44 }
  0x2e   :  { %vm1698_vm3 = vcmp.eq.s32.totalorder %v106_v6, %v165_v7 }
  0x2f   :  { %361 = vmatpush.msra.mxu3 %v1732_v56 }
  0x31   :  { %336 = vmatmul.f32.gmra.mxu2 %v198_v0 }
  0x32   :  { %1113 = vmatmul.msk.f32.gmra.mxu0 %vm1670_vm2, %v194_v5 }
  0x33   :  { %307 = vmatmul.f32.gmra.mxu1 %v1527_v12  ;;  %v191_v12 = vsel %vm187_vm1, %v186_v51, %v183_v57  ;;  %v1738_v57 = vld [vmem:[%s2350_s4] sm:$0xff] }
  0x34   :  { %v199_v14 = vsel %vm1698_vm3, %v191_v12, %v179_v11  ;;  %v195_v15 = vsel %vm1698_vm3, %v179_v11, %v191_v12  ;;  %362 = vmatpush.msra.mxu3 %v1738_v57 }
  0x39   :  { %1115 = vmatmul.msk.f32.gmra.mxu2 %vm1712_vm5, %v199_v14 }
  0x3a   :  { %281 = vmatmul.f32.gmra.mxu0 %v195_v15 }
  0x3b   :  { %310 = vmatmul.f32.gmra.mxu1 %v1439_v46 }
  0x9f   :  { %v273_v46 = vpop.f32.mrf.mxu0 }
  0xa0   :  { %v302_v17 = vpop.f32.mrf.mxu1 }
  0xa1   :  { %v303_v18 = vadd.f32 %v302_v17, %v273_v46 }
  0xa4   :  { %v331_v19 = vpop.f32.mrf.mxu2 }
  0xa5   :  { %v1741_v21 = vadd.f32 %v331_v19, %v303_v18 }
  0xa7   :  { %363 = vmatmul.f32.vlgmr.msra.gmra.mxu3 %v1741_v21  ;;  %v276_v22 = vpop.f32.mrf.mxu0  ;;  %v343_v49 = vmul.f32 %v1741_v21, %v1741_v21 }
  0xa8   :  { %v305_v24 = vpop.f32.mrf.mxu1 }
  0xa9   :  { %v306_v25 = vadd.f32 %v305_v24, %v276_v22 }
  0xac   :  { %v334_v26 = vpop.f32.mrf.mxu2 }
  0xad   :  { %v1744_v27 = vadd.f32 %v334_v26, %v306_v25 }
  0xaf   :  { %366 = vmatmul.f32.gmra.mxu3 %v1744_v27  ;;  %v279_v28 = vpop.f32.mrf.mxu0  ;;  %v344_v50 = vmul.f32 %v1744_v27, %v1744_v27 }
  0xb0   :  { %v308_v30 = vpop.f32.mrf.mxu1 }
  0xb1   :  { %v309_v31 = vadd.f32 %v308_v30, %v279_v28 }
  0xb4   :  { %v337_v35 = vpop.f32.mrf.mxu2 }
  0xb5   :  { %v1747_v20 = vadd.f32 %v337_v35, %v309_v31  ;;  %v1772_v31 = vld [vmem:[%s2351_s5] sm:$0xff] }
  0xb6   :  { %457 = vmatpush.msrb.mxu0 %v1772_v31 }
  0xb7   :  { %369 = vmatmul.f32.gmra.mxu3 %v1747_v20  ;;  %v282_v36 = vpop.f32.mrf.mxu0  ;;  %v345_v51 = vmul.f32 %v1747_v20, %v1747_v20 }
  0xb8   :  { %v311_v37 = vpop.f32.mrf.mxu1 }
  0xb9   :  { %v312_v40 = vadd.f32 %v311_v37, %v282_v36 }
  0xbc   :  { %v340_v42 = vpop.f32.mrf.mxu2 }
  0xbd   :  { %v1750_v47 = vadd.f32 %v340_v42, %v312_v40 }
  0xbf   :  { %372 = vmatmul.f32.gmra.mxu3 %v1750_v47  ;;  %v346_v52 = vmul.f32 %v1750_v47, %v1750_v47 }
  0xc7   :  { %375 = vmatmul.f32.gmra.mxu3 %v343_v49 }
  0xcf   :  { %378 = vmatmul.f32.gmra.mxu3 %v344_v50 }
  0xd7   :  { %381 = vmatmul.f32.gmra.mxu3 %v345_v51 }
  0xdf   :  { %384 = vmatmul.f32.gmra.mxu3 %v346_v52 }
 0x12a   :  { %v364_v53 = vpop.f32.mrf.mxu3 }
 0x12b   :  { %v389_v0 = vsel %vm388_vm7, %v364_v53, 0.0 }
 0x132   :  { %v367_v59 = vpop.f32.mrf.mxu3 }
 0x133   :  { %v390_v63 = vsel %vm388_vm7, %v367_v59, 0.0 }
 0x134   :  { %v391_v6 = vadd.f32 %v390_v63, %v389_v0  ;;  %v1147_v63 = vld [vmem:[%s2348_s1 + $0x270] sm:$0xff] }
 0x13a   :  { %v370_v60 = vpop.f32.mrf.mxu3 }
 0x13b   :  { %v392_v5 = vsel %vm388_vm7, %v370_v60, 0.0 }
 0x13c   :  { %v393_v9 = vadd.f32 %v392_v5, %v391_v6  ;;  %v1132_v5 = vld [vmem:[%s2348_s1 + $0x1f8] sm:$0xff] }
 0x13d   :  { %v1164_v6 = vld [vmem:[%s2348_s1 + $0x2f8] sm:$0xff]  ;;  %565 = vmatpush.msrb.mxu1 %v1132_v5  ;;  %v420_v5 = vld [vmem:[%s2352_s2] sm:$0x1] }
 0x13e   :  { %623 = vmatpush.msra.mxu0 %v1164_v6 }
 0x142   :  { %v373_v61 = vpop.f32.mrf.mxu3 }
 0x143   :  { %v394_v7 = vsel %vm388_vm7, %v373_v61, 0.0 }
 0x144   :  { %v395_v11 = vadd.f32 %v394_v7, %v393_v9  ;;  %v1146_v7 = vld [vmem:[%s2348_s1 + $0x268] sm:$0xff]  ;;  %v1131_v9 = vld [vmem:[%s2348_s1 + $0x1f0] sm:$0xff] }
 0x145   :  { %566 = vmatpush.msrb.mxu1 %v1131_v9 }
 0x146   :  { %v396_v14 = vrot.slane %v395_v11, 4 }
 0x148   :  { %v397_v15 = vadd.f32 %v396_v14, %v395_v11  ;;  %v1163_v11 = vld [vmem:[%s2348_s1 + $0x2f0] sm:$0xff]  ;;  %v1130_v14 = vld [vmem:[%s2348_s1 + $0x1e8] sm:$0xff] }
 0x149   :  { %624 = vmatpush.msra.mxu0 %v1163_v11  ;;  %567 = vmatpush.msrb.mxu1 %v1130_v14  ;;  %v433_v11 = vld [vmem:[%s2353_s3] sm:$0x1] }
 0x14a   :  { %v376_v45 = vpop.f32.mrf.mxu3  ;;  %v398_v18 = vrot.slane %v397_v15, 2 }
 0x14b   :  { %v402_v19 = vsel %vm388_vm7, %v376_v45, 0.0  ;;  %v1148_v45 = vld [vmem:[%s2348_s1 + $0x278] sm:$0xff] }
 0x14c   :  { %v399_v25 = vadd.f32 %v398_v18, %v397_v15  ;;  %594 = vmatpush.msrb.mxu2 %v1148_v45  ;;  %v1162_v15 = vld [vmem:[%s2348_s1 + $0x2e8] sm:$0xff]  ;;  %v1161_v18 = vld [vmem:[%s2348_s1 + $0x2e0] sm:$0xff]  ;;  %v1139_v45 = vld [vmem:[%s2348_s1 + $0x230] sm:$0xff] }
 0x14d   :  { %625 = vmatpush.msra.mxu0 %v1162_v15 }
 0x14e   :  { %v400_v36 = vrot.slane %v399_v25, 1  ;;  %595 = vmatpush.msrb.mxu2 %v1147_v63 }
 0x14f   :  { %626 = vmatpush.msra.mxu0 %v1161_v18 }
 0x150   :  { %v401_v42 = vadd.f32 %v400_v36, %v399_v25  ;;  %596 = vmatpush.msrb.mxu2 %v1146_v7  ;;  %v1143_v25 = vld [vmem:[%s2348_s1 + $0x250] sm:$0xff]  ;;  %v1126_v36 = vld [vmem:[%s2348_s1 + $0x1c8] sm:$0xff] }
 0x152   :  { %v379_v12 = vpop.f32.mrf.mxu3  ;;  %v1775_v51 = vmul.f32 0.001953125, %v401_v42  ;;  %v1141_v42 = vld [vmem:[%s2348_s1 + $0x240] sm:$0xff] }
 0x153   :  { %v403_v17 = vsel %vm388_vm7, %v379_v12, 0.0 }
 0x154   :  { %v404_v24 = vadd.f32 %v403_v17, %v402_v19  ;;  %v417_v59 = vmul.f32 %v1775_v51, %v1775_v51  ;;  %v1129_v17 = vld [vmem:[%s2348_s1 + $0x1e0] sm:$0xff]  ;;  %v1144_v19 = vld [vmem:[%s2348_s1 + $0x258] sm:$0xff] }
 0x155   :  { %568 = vmatpush.msrb.mxu1 %v1129_v17 }
 0x15a   :  { %v382_v46 = vpop.f32.mrf.mxu3 }
 0x15b   :  { %v405_v22 = vsel %vm388_vm7, %v382_v46, 0.0  ;;  %v1145_v46 = vld [vmem:[%s2348_s1 + $0x260] sm:$0xff] }
 0x15c   :  { %v406_v26 = vadd.f32 %v405_v22, %v404_v24  ;;  %597 = vmatpush.msrb.mxu2 %v1145_v46  ;;  %v1128_v22 = vld [vmem:[%s2348_s1 + $0x1d8] sm:$0xff] }
 0x15d   :  { %v1160_v24 = vld [vmem:[%s2348_s1 + $0x2d8] sm:$0xff]  ;;  %569 = vmatpush.msrb.mxu1 %v1128_v22 }
 0x15e   :  { %598 = vmatpush.msrb.mxu2 %v1144_v19  ;;  %627 = vmatpush.msra.mxu0 %v1160_v24  ;;  %v1123_v19 = vld [vmem:[%s2348_s1 + $0x1b0] sm:$0xff]  ;;  %v1136_v22 = vld [vmem:[%s2348_s1 + $0x218] sm:$0xff]  ;;  %v1122_v24 = vld [vmem:[%s2348_s1 + $0x1a8] sm:$0xff] }
 0x160   :  { %599 = vmatpush.msrb.mxu2 %v1143_v25  ;;  %v1154_v25 = vld [vmem:[%s2348_s1 + $0x2a8] sm:$0xff] }
 0x162   :  { %v385_v28 = vpop.f32.mrf.mxu3 }
 0x163   :  { %v407_v30 = vsel %vm388_vm7, %v385_v28, 0.0  ;;  %v1159_v28 = vld [vmem:[%s2348_s1 + $0x2d0] sm:$0xff] }
 0x164   :  { %v408_v35 = vadd.f32 %v407_v30, %v406_v26  ;;  %v1127_v26 = vld [vmem:[%s2348_s1 + $0x1d0] sm:$0xff]  ;;  %v1142_v30 = vld [vmem:[%s2348_s1 + $0x248] sm:$0xff]  ;;  %628 = vmatpush.msra.mxu0 %v1159_v28  ;;  %v1121_v28 = vld [vmem:[%s2348_s1 + $0x1a0] sm:$0xff] }
 0x165   :  { %570 = vmatpush.msrb.mxu1 %v1127_v26  ;;  %600 = vmatpush.msrb.mxu2 %v1142_v30  ;;  %v1135_v26 = vld [vmem:[%s2348_s1 + $0x210] sm:$0xff]  ;;  %v1153_v30 = vld [vmem:[%s2348_s1 + $0x2a0] sm:$0xff] }
 0x166   :  { %v409_v37 = vrot.slane %v408_v35, 4 }
 0x167   :  { %571 = vmatpush.msrb.mxu1 %v1126_v36  ;;  %601 = vmatpush.msrb.mxu2 %v1141_v42  ;;  %v1120_v36 = vld [vmem:[%s2348_s1 + $0x198] sm:$0xff]  ;;  %v1119_v42 = vld [vmem:[%s2348_s1 + $0x190] sm:$0xff] }
 0x168   :  { %v410_v40 = vadd.f32 %v409_v37, %v408_v35  ;;  %v1158_v37 = vld [vmem:[%s2348_s1 + $0x2c8] sm:$0xff] }
 0x169   :  { %629 = vmatpush.msra.mxu0 %v1158_v37  ;;  %v1152_v37 = vld [vmem:[%s2348_s1 + $0x298] sm:$0xff] }
 0x16a   :  { %v411_v49 = vrot.slane %v410_v40, 2 }
 0x16c   :  { %v412_v50 = vadd.f32 %v411_v49, %v410_v40  ;;  %v1125_v49 = vld [vmem:[%s2348_s1 + $0x1c0] sm:$0xff] }
 0x16d   :  { %572 = vmatpush.msrb.mxu1 %v1125_v49  ;;  %v1151_v49 = vld [vmem:[%s2348_s1 + $0x290] sm:$0xff] }
 0x16e   :  { %v413_v52 = vrot.slane %v412_v50, 1 }
 0x170   :  { %v414_v53 = vadd.f32 %v413_v52, %v412_v50  ;;  %v1157_v50 = vld [vmem:[%s2348_s1 + $0x2c0] sm:$0xff] }
 0x171   :  { %630 = vmatpush.msra.mxu0 %v1157_v50  ;;  %v1118_v50 = vld [vmem:[%s2348_s1 + $0x188] sm:$0xff] }
 0x172   :  { %v416_v60 = vmul.f32 0.001953125, %v414_v53  ;;  %v1140_v53 = vld [vmem:[%s2348_s1 + $0x238] sm:$0xff] }
 0x173   :  { %602 = vmatpush.msrb.mxu2 %v1140_v53  ;;  %v1117_v53 = vld [vmem:[%s2348_s1 + $0x180] sm:$0xff] }
 0x174   :  { %v418_v61 = vsub.f32 %v416_v60, %v417_v59  ;;  %v1124_v59 = vld [vmem:[%s2348_s1 + $0x1b8] sm:$0xff] }
 0x175   :  { %v1156_v60 = vld [vmem:[%s2348_s1 + $0x2b8] sm:$0xff]  ;;  %573 = vmatpush.msrb.mxu1 %v1124_v59  ;;  %603 = vmatpush.msrb.mxu2 %v1139_v45  ;;  %v1149_v59 = vld [vmem:[%s2348_s1 + $0x280] sm:$0xff] }
 0x176   :  { %v419_v0 = vmax.f32 %v418_v61, 0.0  ;;  %631 = vmatpush.msra.mxu0 %v1156_v60 }
 0x177   :  { %574 = vmatpush.msrb.mxu1 %v1123_v19 }
 0x178   :  { %v421_v12 = vadd.f32 1e-05, %v419_v0  ;;  %v1138_v0 = vld [vmem:[%s2348_s1 + $0x228] sm:$0xff] }
 0x179   :  { %604 = vmatpush.msrb.mxu2 %v1138_v0  ;;  %575 = vmatpush.msrb.mxu1 %v1122_v24 }
 0x17a   :  { %1255 = vrsqrt.f32 %v421_v12  ;;  %vm428_vm10 = vweird.f32 %v421_v12 }
 0x17b   :  { %576 = vmatpush.msrb.mxu1 %v1121_v28 }
 0x17d   :  { %577 = vmatpush.msrb.mxu1 %v1120_v36 }
 0x17f   :  { %578 = vmatpush.msrb.mxu1 %v1119_v42 }
 0x180   :  { %v1256_v35 = vpop.eup %1255 }
 0x181   :  { %v423_v40 = vmul.f32 %v1256_v35, %v421_v12  ;;  %vm429_vm8 = vweird.f32 %v1256_v35  ;;  %v1137_v12 = vld [vmem:[%s2348_s1 + $0x220] sm:$0xff]  ;;  %579 = vmatpush.msrb.mxu1 %v1118_v50 }
 0x182   :  { %vm430_vm12 = vmor %vm428_vm10, %vm429_vm8  ;;  %605 = vmatpush.msrb.mxu2 %v1137_v12 }
 0x183   :  { %v424_v52 = vmul.f32 %v1256_v35, %v423_v40  ;;  %v1133_v40 = vld [vmem:[%s2348_s1 + $0x200] sm:$0xff]  ;;  %580 = vmatpush.msrb.mxu1 %v1117_v53 }
 0x184   :  { %606 = vmatpush.msrb.mxu2 %v1136_v22 }
 0x185   :  { %v425_v61 = vmul.f32 0.5, %v424_v52  ;;  %v1150_v52 = vld [vmem:[%s2348_s1 + $0x288] sm:$0xff]  ;;  %656 = vmatpush.msra.mxu1 %v1488_v1 }
 0x186   :  { %607 = vmatpush.msrb.mxu2 %v1135_v26 }
 0x187   :  { %v426_v63 = vsub.f32 1.5, %v425_v61  ;;  %657 = vmatpush.msra.mxu1 %v1493_v2 }
 0x189   :  { %v427_v6 = vmul.f32 %v1256_v35, %v426_v63  ;;  %658 = vmatpush.msra.mxu1 %v1532_v13 }
 0x18b   :  { %v431_v7 = vsel %vm430_vm12, %v1256_v35, %v427_v6  ;;  %v1134_v35 = vld [vmem:[%s2348_s1 + $0x208] sm:$0xff]  ;;  %659 = vmatpush.msra.mxu1 %v1574_v29 }
 0x18c   :  { %v432_v9 = vmul.f32 %v431_v7, %v420_v5  ;;  %608 = vmatpush.msrb.mxu2 %v1134_v35 }
 0x18d   :  { %660 = vmatpush.msra.mxu1 %v1583_v33 }
 0x18e   :  { %v434_v14 = vmul.f32 %v432_v9, %v1775_v51  ;;  %v436_v46 = vperm.slane %v432_v9, 0  ;;  %v1155_v51 = vld [vmem:[%s2348_s1 + $0x2b0] sm:$0xff]  ;;  %609 = vmatpush.msrb.mxu2 %v1133_v40 }
 0x18f   :  { %632 = vmatpush.msra.mxu0 %v1155_v51  ;;  %661 = vmatpush.msra.mxu1 %v1602_v39 }
 0x190   :  { %v435_v15 = vsub.f32 %v433_v11, %v434_v14  ;;  %765 = vmatpush.msra.mxu2 %v1772_v31 }
 0x191   :  { %633 = vmatpush.msra.mxu0 %v1154_v25  ;;  %662 = vmatpush.msra.mxu1 %v1618_v48 }
 0x192   :  { %v437_v17 = vperm.slane %v435_v15, 0 }
 0x193   :  { %634 = vmatpush.msra.mxu0 %v1153_v30  ;;  %663 = vmatpush.msra.mxu1 %v1632_v54 }
 0x194   :  { %v438_v18 = vsel %vm170_vm13, %v436_v46, %v437_v17 }
 0x195   :  { %1116 = vmatmul.msk.f32.vlgmr.msrb.gmra.mxu0 %vm388_vm7, %v438_v18  ;;  %664 = vmatpush.msra.mxu1 %v1641_v55 }
 0x196   :  { %635 = vmatpush.msra.mxu0 %v1152_v37 }
 0x197   :  { %665 = vmatpush.msra.mxu1 %v1656_v62 }
 0x198   :  { %636 = vmatpush.msra.mxu0 %v1151_v49 }
 0x199   :  { %666 = vmatpush.msra.mxu1 %v1668_v38 }
 0x19a   :  { %637 = vmatpush.msra.mxu0 %v1150_v52 }
 0x19b   :  { %667 = vmatpush.msra.mxu1 %v1686_v8 }
 0x19c   :  { %638 = vmatpush.msra.mxu0 %v1149_v59 }
 0x19d   :  { %668 = vmatpush.msra.mxu1 %v1696_v43 }
 0x19f   :  { %669 = vmatpush.msra.mxu1 %v1726_v44 }
 0x1a1   :  { %670 = vmatpush.msra.mxu1 %v1732_v56 }
 0x1a3   :  { %671 = vmatpush.msra.mxu1 %v1738_v57 }
 0x212   :  { %v459_v60 = vpop.f32.mrf.mxu0 }
 0x213   :  { %v462_v61 = vperm.slane %v459_v60, 0  ;;  %v467_v45 = vperm.slane %v459_v60, 1 }
 0x215   :  { %v464_v63 = vmul.f32 %v462_v61, %v1744_v27  ;;  %v465_v0 = vmul.f32 %v462_v61, %v1747_v20  ;;  %v466_v5 = vmul.f32 %v462_v61, %v1750_v47  ;;  %v463_v6 = vmul.f32 %v462_v61, %v1741_v21 }
 0x217   :  { %v469_v7 = vadd.f32 %v467_v45, %v464_v63  ;;  %v470_v9 = vadd.f32 %v467_v45, %v465_v0  ;;  %v471_v11 = vadd.f32 %v467_v45, %v466_v5  ;;  %v468_v14 = vadd.f32 %v467_v45, %v463_v6 }
 0x219   :  { %vm473_vm15 = vcmp.ge.f32.partialorder %v469_v7, 0.0  ;;  %vm475_vm8 = vcmp.ge.f32.partialorder %v471_v11, 0.0  ;;  %v477_v15 = vmul.f32 0.01, %v469_v7  ;;  %v479_v46 = vmul.f32 0.01, %v471_v11 }
 0x21a   :  { %vm472_vm10 = vcmp.ge.f32.partialorder %v468_v14, 0.0  ;;  %v476_v27 = vmul.f32 0.01, %v468_v14  ;;  %v478_v20 = vmul.f32 0.01, %v470_v9  ;;  %vm474_vm12 = vcmp.ge.f32.partialorder %v470_v9, 0.0 }
 0x21b   :  { %v481_v47 = vsel %vm473_vm15, %v469_v7, %v477_v15  ;;  %v483_v17 = vsel %vm475_vm8, %v471_v11, %v479_v46 }
 0x21c   :  { %v480_v21 = vsel %vm472_vm10, %v468_v14, %v476_v27  ;;  %v487_v18 = vrot.slane %v483_v17, 7  ;;  %v493_v12 = vrot.slane %v481_v47, 1  ;;  %v482_v22 = vsel %vm474_vm12, %v470_v9, %v478_v20 }
 0x21d   :  { %v484_v19 = vrot.slane %v480_v21, 7  ;;  %v492_v51 = vrot.slane %v480_v21, 1  ;;  %610 = vmatmul.f32.vlgmr.msrb.gmra.mxu2 %v480_v21  ;;  %v485_v30 = vrot.slane %v481_v47, 7  ;;  %v494_v35 = vrot.slane %v482_v22, 1 }
 0x21f   :  { %v491_v24 = vsel %vm105_vm0, %v487_v18, %v484_v19  ;;  %v498_v25 = vsel %vm187_vm1, %v492_v51, %v493_v12  ;;  %v490_v36 = vsel %vm105_vm0, %v484_v19, %v485_v30  ;;  %v497_v37 = vsel %vm187_vm1, %v493_v12, %v494_v35 }
 0x220   :  { %v500_v26 = vsel %vm1498_vm4, %v491_v24, %v498_v25  ;;  %v504_v28 = vsel %vm1498_vm4, %v498_v25, %v491_v24  ;;  %v501_v40 = vsel %vm1585_vm9, %v490_v36, %v497_v37  ;;  %v505_v42 = vsel %vm1585_vm9, %v497_v37, %v490_v36 }
 0x221   :  { %1165 = vmatmul.msk.f32.vlgmr.msrb.gmra.mxu1 %vm1555_vm6, %v500_v26  ;;  %639 = vmatmul.f32.vlgmr.msra.gmra.mxu0 %v504_v28 }
 0x222   :  { %964 = vmatpush.msrb.mxu1 %v1488_v1  ;;  %v486_v1 = vrot.slane %v482_v22, 7 }
 0x224   :  { %965 = vmatpush.msrb.mxu1 %v1493_v2  ;;  %v495_v2 = vrot.slane %v483_v17, 1 }
 0x225   :  { %613 = vmatmul.f32.gmra.mxu2 %v481_v47 }
 0x226   :  { %966 = vmatpush.msrb.mxu1 %v1532_v13  ;;  %v489_v13 = vsel %vm105_vm0, %v485_v30, %v486_v1  ;;  %v496_v49 = vsel %vm187_vm1, %v494_v35, %v495_v2 }
 0x227   :  { %v506_v50 = vsel %vm1643_vm14, %v496_v49, %v489_v13 }
 0x228   :  { %967 = vmatpush.msrb.mxu1 %v1574_v29  ;;  %v502_v29 = vsel %vm1643_vm14, %v489_v13, %v496_v49 }
 0x229   :  { %584 = vmatmul.f32.gmra.mxu1 %v501_v40  ;;  %1167 = vmatmul.msk.f32.gmra.mxu0 %vm1609_vm11, %v505_v42 }
 0x22a   :  { %968 = vmatpush.msrb.mxu1 %v1583_v33  ;;  %v488_v33 = vsel %vm105_vm0, %v486_v1, %v487_v18 }
 0x22c   :  { %969 = vmatpush.msrb.mxu1 %v1602_v39  ;;  %v499_v39 = vsel %vm187_vm1, %v495_v2, %v492_v51 }
 0x22d   :  { %616 = vmatmul.f32.gmra.mxu2 %v482_v22 }
 0x22e   :  { %970 = vmatpush.msrb.mxu1 %v1618_v48  ;;  %v503_v48 = vsel %vm1698_vm3, %v488_v33, %v499_v39 }
 0x230   :  { %971 = vmatpush.msrb.mxu1 %v1632_v54  ;;  %v507_v54 = vsel %vm1698_vm3, %v499_v39, %v488_v33 }
 0x231   :  { %1166 = vmatmul.msk.f32.gmra.mxu1 %vm1670_vm2, %v502_v29  ;;  %645 = vmatmul.f32.gmra.mxu0 %v506_v50 }
 0x232   :  { %972 = vmatpush.msrb.mxu1 %v1641_v55 }
 0x234   :  { %973 = vmatpush.msrb.mxu1 %v1656_v62 }
 0x235   :  { %619 = vmatmul.f32.gmra.mxu2 %v483_v17 }
 0x236   :  { %974 = vmatpush.msrb.mxu1 %v1668_v38 }
 0x238   :  { %975 = vmatpush.msrb.mxu1 %v1686_v8 }
 0x239   :  { %590 = vmatmul.f32.gmra.mxu1 %v503_v48  ;;  %1168 = vmatmul.msk.f32.gmra.mxu0 %vm1712_vm5, %v507_v54 }
 0x23a   :  { %976 = vmatpush.msrb.mxu1 %v1696_v43 }
 0x23c   :  { %977 = vmatpush.msrb.mxu1 %v1726_v44 }
 0x23e   :  { %978 = vmatpush.msrb.mxu1 %v1732_v56 }
 0x240   :  { %979 = vmatpush.msrb.mxu1 %v1738_v57 }
 0x29e   :  { %v582_v55 = vpop.f32.mrf.mxu1  ;;  %v640_v62 = vpop.f32.mrf.mxu0 }
 0x2a0   :  { %v611_v38 = vpop.f32.mrf.mxu2 }
 0x2a1   :  { %v612_v52 = vadd.f32 %v611_v38, %v582_v55 }
 0x2a3   :  { %v2011_v53 = vadd.f32 %v640_v62, %v612_v52 }
 0x2a5   :  { %672 = vmatmul.f32.vlgmr.msra.gmra.mxu1 %v2011_v53  ;;  %v652_v11 = vmul.f32 %v2011_v53, %v2011_v53 }
 0x2a6   :  { %v585_v8 = vpop.f32.mrf.mxu1  ;;  %v643_v59 = vpop.f32.mrf.mxu0 }
 0x2a8   :  { %v614_v60 = vpop.f32.mrf.mxu2 }
 0x2a9   :  { %v615_v61 = vadd.f32 %v614_v60, %v585_v8 }
 0x2ab   :  { %v2014_v45 = vadd.f32 %v643_v59, %v615_v61 }
 0x2ad   :  { %675 = vmatmul.f32.gmra.mxu1 %v2014_v45  ;;  %v653_v14 = vmul.f32 %v2014_v45, %v2014_v45 }
 0x2ae   :  { %v588_v43 = vpop.f32.mrf.mxu1  ;;  %v646_v44 = vpop.f32.mrf.mxu0 }
 0x2b0   :  { %v617_v56 = vpop.f32.mrf.mxu2 }
 0x2b1   :  { %v618_v57 = vadd.f32 %v617_v56, %v588_v43  ;;  %v1185_v43 = vld [vmem:[%s2348_s1 + $0x378] sm:$0xff] }
 0x2b2   :  { %873 = vmatpush.msrb.mxu3 %v1185_v43 }
 0x2b3   :  { %v2017_v63 = vadd.f32 %v646_v44, %v618_v57  ;;  %v1184_v44 = vld [vmem:[%s2348_s1 + $0x370] sm:$0xff]  ;;  %v1183_v57 = vld [vmem:[%s2348_s1 + $0x368] sm:$0xff] }
 0x2b4   :  { %874 = vmatpush.msrb.mxu3 %v1184_v44  ;;  %v1190_v44 = vld [vmem:[%s2348_s1 + $0x3a0] sm:$0xff] }
 0x2b5   :  { %678 = vmatmul.f32.gmra.mxu1 %v2017_v63  ;;  %v654_v15 = vmul.f32 %v2017_v63, %v2017_v63 }
 0x2b6   :  { %v591_v0 = vpop.f32.mrf.mxu1  ;;  %v649_v7 = vpop.f32.mrf.mxu0  ;;  %875 = vmatpush.msrb.mxu3 %v1183_v57  ;;  %v1207_v57 = vld [vmem:[%s2348_s1 + $0x428] sm:$0xff] }
 0x2b8   :  { %v620_v5 = vpop.f32.mrf.mxu2 }
 0x2b9   :  { %v621_v6 = vadd.f32 %v620_v5, %v591_v0  ;;  %v1201_v0 = vld [vmem:[%s2348_s1 + $0x3f8] sm:$0xff] }
 0x2ba   :  { %902 = vmatpush.msrb.mxu0 %v1201_v0  ;;  %v1172_v0 = vld [vmem:[%s2348_s1 + $0x310] sm:$0xff] }
 0x2bb   :  { %v2020_v9 = vadd.f32 %v649_v7, %v621_v6  ;;  %v1200_v6 = vld [vmem:[%s2348_s1 + $0x3f0] sm:$0xff]  ;;  %v1182_v7 = vld [vmem:[%s2348_s1 + $0x360] sm:$0xff] }
 0x2bc   :  { %903 = vmatpush.msrb.mxu0 %v1200_v6  ;;  %876 = vmatpush.msrb.mxu3 %v1182_v7  ;;  %v1206_v6 = vld [vmem:[%s2348_s1 + $0x420] sm:$0xff]  ;;  %v1171_v7 = vld [vmem:[%s2348_s1 + $0x308] sm:$0xff] }
 0x2bd   :  { %681 = vmatmul.f32.gmra.mxu1 %v2020_v9  ;;  %v655_v46 = vmul.f32 %v2020_v9, %v2020_v9 }
 0x2c5   :  { %684 = vmatmul.f32.gmra.mxu1 %v652_v11  ;;  %v1199_v11 = vld [vmem:[%s2348_s1 + $0x3e8] sm:$0xff] }
 0x2c6   :  { %904 = vmatpush.msrb.mxu0 %v1199_v11  ;;  %v1187_v11 = vld [vmem:[%s2348_s1 + $0x388] sm:$0xff] }
 0x2cd   :  { %687 = vmatmul.f32.gmra.mxu1 %v653_v14  ;;  %v1217_v14 = vld [vmem:[%s2348_s1 + $0x478] sm:$0xff] }
 0x2ce   :  { %931 = vmatpush.msrb.mxu2 %v1217_v14  ;;  %v1205_v14 = vld [vmem:[%s2348_s1 + $0x418] sm:$0xff] }
 0x2d5   :  { %690 = vmatmul.f32.gmra.mxu1 %v654_v15  ;;  %v1216_v15 = vld [vmem:[%s2348_s1 + $0x470] sm:$0xff] }
 0x2d6   :  { %932 = vmatpush.msrb.mxu2 %v1216_v15  ;;  %v1186_v15 = vld [vmem:[%s2348_s1 + $0x380] sm:$0xff] }
 0x2dd   :  { %693 = vmatmul.f32.gmra.mxu1 %v655_v46  ;;  %v1181_v46 = vld [vmem:[%s2348_s1 + $0x358] sm:$0xff] }
 0x2de   :  { %877 = vmatpush.msrb.mxu3 %v1181_v46  ;;  %v1170_v46 = vld [vmem:[%s2348_s1 + $0x300] sm:$0xff] }
 0x322   :  { %v673_v27 = vpop.f32.mrf.mxu1 }
 0x323   :  { %v697_v12 = vsel %vm388_vm7, %v673_v27, 0.0  ;;  %v1198_v27 = vld [vmem:[%s2348_s1 + $0x3e0] sm:$0xff] }
 0x324   :  { %905 = vmatpush.msrb.mxu0 %v1198_v27  ;;  %v1204_v27 = vld [vmem:[%s2348_s1 + $0x410] sm:$0xff] }
 0x32a   :  { %v676_v20 = vpop.f32.mrf.mxu1 }
 0x32b   :  { %v698_v18 = vsel %vm388_vm7, %v676_v20, 0.0  ;;  %v1215_v20 = vld [vmem:[%s2348_s1 + $0x468] sm:$0xff] }
 0x32c   :  { %v699_v51 = vadd.f32 %v698_v18, %v697_v12  ;;  %v1179_v18 = vld [vmem:[%s2348_s1 + $0x348] sm:$0xff]  ;;  %933 = vmatpush.msrb.mxu2 %v1215_v20  ;;  %v1196_v12 = vld [vmem:[%s2348_s1 + $0x3d0] sm:$0xff] }
 0x32d   :  { %v1203_v20 = vld [vmem:[%s2348_s1 + $0x408] sm:$0xff] }
 0x332   :  { %v679_v47 = vpop.f32.mrf.mxu1 }
 0x333   :  { %v700_v19 = vsel %vm388_vm7, %v679_v47, 0.0  ;;  %v1180_v47 = vld [vmem:[%s2348_s1 + $0x350] sm:$0xff] }
 0x334   :  { %v701_v24 = vadd.f32 %v700_v19, %v699_v51  ;;  %878 = vmatpush.msrb.mxu3 %v1180_v47  ;;  %v1213_v51 = vld [vmem:[%s2348_s1 + $0x458] sm:$0xff] }
 0x335   :  { %v1261_v47 = vld [vmem:[%s2350_s4 + $0x78] sm:$0xff] }
 0x336   :  { %879 = vmatpush.msrb.mxu3 %v1179_v18  ;;  %v1263_v18 = vld [vmem:[%s2350_s4 + $0x68] sm:$0xff] }
 0x33a   :  { %v682_v17 = vpop.f32.mrf.mxu1 }
 0x33b   :  { %v702_v22 = vsel %vm388_vm7, %v682_v17, 0.0  ;;  %v1197_v17 = vld [vmem:[%s2348_s1 + $0x3d8] sm:$0xff] }
 0x33c   :  { %v703_v25 = vadd.f32 %v702_v22, %v701_v24  ;;  %906 = vmatpush.msrb.mxu0 %v1197_v17  ;;  %v1178_v24 = vld [vmem:[%s2348_s1 + $0x340] sm:$0xff] }
 0x33d   :  { %880 = vmatpush.msrb.mxu3 %v1178_v24  ;;  %v1202_v17 = vld [vmem:[%s2348_s1 + $0x400] sm:$0xff]  ;;  %v1269_v24 = vld [vmem:[%s2350_s4 + $0x38] sm:$0xff] }
 0x33e   :  { %v704_v28 = vrot.slane %v703_v25, 4  ;;  %907 = vmatpush.msrb.mxu0 %v1196_v12  ;;  %v1264_v12 = vld [vmem:[%s2350_s4 + $0x60] sm:$0xff] }
 0x340   :  { %v705_v30 = vadd.f32 %v704_v28, %v703_v25  ;;  %v1195_v25 = vld [vmem:[%s2348_s1 + $0x3c8] sm:$0xff] }
 0x341   :  { %908 = vmatpush.msrb.mxu0 %v1195_v25  ;;  %v1270_v25 = vld [vmem:[%s2350_s4 + $0x30] sm:$0xff] }
 0x342   :  { %v685_v21 = vpop.f32.mrf.mxu1  ;;  %v706_v37 = vrot.slane %v705_v30, 2 }
 0x343   :  { %v710_v40 = vsel %vm388_vm7, %v685_v21, 0.0  ;;  %v1214_v21 = vld [vmem:[%s2348_s1 + $0x460] sm:$0xff] }
 0x344   :  { %v707_v2 = vadd.f32 %v706_v37, %v705_v30  ;;  %934 = vmatpush.msrb.mxu2 %v1214_v21  ;;  %v1177_v30 = vld [vmem:[%s2348_s1 + $0x338] sm:$0xff]  ;;  %v1262_v21 = vld [vmem:[%s2350_s4 + $0x70] sm:$0xff] }
 0x345   :  { %881 = vmatpush.msrb.mxu3 %v1177_v30  ;;  %v1271_v30 = vld [vmem:[%s2350_s4 + $0x28] sm:$0xff] }
 0x346   :  { %v708_v33 = vrot.slane %v707_v2, 1  ;;  %935 = vmatpush.msrb.mxu2 %v1213_v51  ;;  %v1267_v51 = vld [vmem:[%s2350_s4 + $0x48] sm:$0xff] }
 0x348   :  { %v709_v54 = vadd.f32 %v708_v33, %v707_v2 }
 0x34a   :  { %v688_v26 = vpop.f32.mrf.mxu1  ;;  %v2039_v38 = vmul.f32 0.001953125, %v709_v54 }
 0x34b   :  { %v711_v36 = vsel %vm388_vm7, %v688_v26, 0.0  ;;  %v1212_v26 = vld [vmem:[%s2348_s1 + $0x450] sm:$0xff] }
 0x34c   :  { %v712_v1 = vadd.f32 %v711_v36, %v710_v40  ;;  %v725_v59 = vmul.f32 %v2039_v38, %v2039_v38  ;;  %v1211_v36 = vld [vmem:[%s2348_s1 + $0x448] sm:$0xff]  ;;  %v1176_v40 = vld [vmem:[%s2348_s1 + $0x330] sm:$0xff]  ;;  %936 = vmatpush.msrb.mxu2 %v1212_v26 }
 0x34d   :  { %882 = vmatpush.msrb.mxu3 %v1176_v40 }
 0x34e   :  { %937 = vmatpush.msrb.mxu2 %v1211_v36 }
 0x352   :  { %v691_v35 = vpop.f32.mrf.mxu1 }
 0x353   :  { %v713_v42 = vsel %vm388_vm7, %v691_v35, 0.0  ;;  %v1194_v35 = vld [vmem:[%s2348_s1 + $0x3c0] sm:$0xff] }
 0x354   :  { %v714_v13 = vadd.f32 %v713_v42, %v712_v1  ;;  %v1193_v42 = vld [vmem:[%s2348_s1 + $0x3b8] sm:$0xff]  ;;  %909 = vmatpush.msrb.mxu0 %v1194_v35  ;;  %v1210_v1 = vld [vmem:[%s2348_s1 + $0x440] sm:$0xff] }
 0x355   :  { %938 = vmatpush.msrb.mxu2 %v1210_v1  ;;  %v1272_v1 = vld [vmem:[%s2350_s4 + $0x20] sm:$0xff] }
 0x356   :  { %910 = vmatpush.msrb.mxu0 %v1193_v42 }
 0x35a   :  { %v694_v49 = vpop.f32.mrf.mxu1 }
 0x35b   :  { %v715_v29 = vsel %vm388_vm7, %v694_v49, 0.0  ;;  %v1192_v49 = vld [vmem:[%s2348_s1 + $0x3b0] sm:$0xff] }
 0x35c   :  { %v716_v50 = vadd.f32 %v715_v29, %v714_v13  ;;  %v1175_v13 = vld [vmem:[%s2348_s1 + $0x328] sm:$0xff]  ;;  %v1209_v29 = vld [vmem:[%s2348_s1 + $0x438] sm:$0xff]  ;;  %911 = vmatpush.msrb.mxu0 %v1192_v49 }
 0x35d   :  { %883 = vmatpush.msrb.mxu3 %v1175_v13  ;;  %939 = vmatpush.msrb.mxu2 %v1209_v29 }
 0x35e   :  { %v717_v39 = vrot.slane %v716_v50, 4 }
 0x360   :  { %v718_v48 = vadd.f32 %v717_v39, %v716_v50  ;;  %v728_v50 = vld [vmem:[%s2352_s2 + $0x1] sm:$0x1] }
 0x361   :  { %v1174_v39 = vld [vmem:[%s2348_s1 + $0x320] sm:$0xff] }
 0x362   :  { %v719_v55 = vrot.slane %v718_v48, 2  ;;  %884 = vmatpush.msrb.mxu3 %v1174_v39 }
 0x364   :  { %v720_v62 = vadd.f32 %v719_v55, %v718_v48  ;;  %v1191_v48 = vld [vmem:[%s2348_s1 + $0x3a8] sm:$0xff]  ;;  %v1173_v55 = vld [vmem:[%s2348_s1 + $0x318] sm:$0xff] }
 0x365   :  { %912 = vmatpush.msrb.mxu0 %v1191_v48  ;;  %885 = vmatpush.msrb.mxu3 %v1173_v55 }
 0x366   :  { %v721_v52 = vrot.slane %v720_v62, 1 }
 0x367   :  { %913 = vmatpush.msrb.mxu0 %v1190_v44  ;;  %886 = vmatpush.msrb.mxu3 %v1172_v0 }
 0x368   :  { %v722_v8 = vadd.f32 %v721_v52, %v720_v62  ;;  %v741_v52 = vld [vmem:[%s2353_s3 + $0x1] sm:$0x1] }
 0x369   :  { %887 = vmatpush.msrb.mxu3 %v1171_v7 }
 0x36a   :  { %v724_v60 = vmul.f32 0.001953125, %v722_v8 }
 0x36b   :  { %888 = vmatpush.msrb.mxu3 %v1170_v46 }
 0x36c   :  { %v726_v61 = vsub.f32 %v724_v60, %v725_v59 }
 0x36d   :  { %1224 = vmatpush.msra.mxu3 %v1261_v47 }
 0x36e   :  { %v727_v56 = vmax.f32 %v726_v61, 0.0 }
 0x36f   :  { %1226 = vmatpush.msra.mxu3 %v1262_v21 }
 0x370   :  { %v2055_v5 = vadd.f32 1e-05, %v727_v56  ;;  %v1208_v56 = vld [vmem:[%s2348_s1 + $0x430] sm:$0xff] }
 0x371   :  { %940 = vmatpush.msrb.mxu2 %v1208_v56  ;;  %1228 = vmatpush.msra.mxu3 %v1263_v18 }
 0x372   :  { %1257 = vrsqrt.f32 %v2055_v5  ;;  %vm736_vm8 = vweird.f32 %v2055_v5 }
 0x373   :  { %941 = vmatpush.msrb.mxu2 %v1207_v57  ;;  %1230 = vmatpush.msra.mxu3 %v1264_v12 }
 0x375   :  { %942 = vmatpush.msrb.mxu2 %v1206_v6 }
 0x377   :  { %943 = vmatpush.msrb.mxu2 %v1205_v14 }
 0x378   :  { %v1258_v19 = vpop.eup %1257 }
 0x379   :  { %v731_v22 = vmul.f32 %v1258_v19, %v2055_v5  ;;  %vm737_vm15 = vweird.f32 %v1258_v19  ;;  %v1188_v5 = vld [vmem:[%s2348_s1 + $0x390] sm:$0xff]  ;;  %944 = vmatpush.msrb.mxu2 %v1204_v27 }
 0x37a   :  { %vm738_vm10 = vmor %vm736_vm8, %vm737_vm15 }
 0x37b   :  { %v732_v28 = vmul.f32 %v1258_v19, %v731_v22  ;;  %945 = vmatpush.msrb.mxu2 %v1203_v20  ;;  %v1268_v22 = vld [vmem:[%s2350_s4 + $0x40] sm:$0xff] }
 0x37d   :  { %v733_v37 = vmul.f32 0.5, %v732_v28  ;;  %946 = vmatpush.msrb.mxu2 %v1202_v17 }
 0x37f   :  { %v734_v2 = vsub.f32 1.5, %v733_v37 }
 0x381   :  { %v735_v33 = vmul.f32 %v1258_v19, %v734_v2 }
 0x383   :  { %v739_v54 = vsel %vm738_vm10, %v1258_v19, %v735_v33  ;;  %v1266_v19 = vld [vmem:[%s2350_s4 + $0x50] sm:$0xff] }
 0x384   :  { %v740_v62 = vmul.f32 %v739_v54, %v728_v50  ;;  %v1275_v54 = vld [vmem:[%s2350_s4 + $0x8] sm:$0xff] }
 0x386   :  { %v742_v8 = vmul.f32 %v740_v62, %v2039_v38  ;;  %v744_v60 = vperm.slane %v740_v62, 0  ;;  %v1189_v38 = vld [vmem:[%s2348_s1 + $0x398] sm:$0xff] }
 0x387   :  { %914 = vmatpush.msrb.mxu0 %v1189_v38 }
 0x388   :  { %v743_v59 = vsub.f32 %v741_v52, %v742_v8 }
 0x389   :  { %915 = vmatpush.msrb.mxu0 %v1188_v5 }
 0x38a   :  { %v745_v61 = vperm.slane %v743_v59, 0 }
 0x38b   :  { %916 = vmatpush.msrb.mxu0 %v1187_v11 }
 0x38c   :  { %v746_v43 = vsel %vm170_vm13, %v744_v60, %v745_v61  ;;  %v1276_v60 = vld [vmem:[%s2350_s4] sm:$0xff] }
 0x38d   :  { %1169 = vmatmul.msk.f32.vlgmr.msra.gmra.mxu2 %vm388_vm7, %v746_v43  ;;  %917 = vmatpush.msrb.mxu0 %v1186_v15 }
 0x38e   :  { %1223 = vmatpush.msra.mxu2 %v1261_v47 }
 0x38f   :  { %1073 = vmatpush.msra.mxu0 %v1772_v31  ;;  %v1265_v31 = vld [vmem:[%s2350_s4 + $0x58] sm:$0xff] }
 0x390   :  { %1225 = vmatpush.msra.mxu2 %v1262_v21  ;;  %1232 = vmatpush.msra.mxu3 %v1265_v31 }
 0x392   :  { %1227 = vmatpush.msra.mxu2 %v1263_v18  ;;  %1234 = vmatpush.msra.mxu3 %v1266_v19 }
 0x394   :  { %1229 = vmatpush.msra.mxu2 %v1264_v12  ;;  %1236 = vmatpush.msra.mxu3 %v1267_v51 }
 0x396   :  { %1231 = vmatpush.msra.mxu2 %v1265_v31  ;;  %1238 = vmatpush.msra.mxu3 %v1268_v22 }
 0x398   :  { %1233 = vmatpush.msra.mxu2 %v1266_v19  ;;  %1240 = vmatpush.msra.mxu3 %v1269_v24 }
 0x39a   :  { %1235 = vmatpush.msra.mxu2 %v1267_v51  ;;  %1242 = vmatpush.msra.mxu3 %v1270_v25 }
 0x39c   :  { %1237 = vmatpush.msra.mxu2 %v1268_v22  ;;  %1244 = vmatpush.msra.mxu3 %v1271_v30 }
 0x39e   :  { %1239 = vmatpush.msra.mxu2 %v1269_v24  ;;  %1246 = vmatpush.msra.mxu3 %v1272_v1 }
 0x3a0   :  { %1241 = vmatpush.msra.mxu2 %v1270_v25 }
 0x3a2   :  { %1243 = vmatpush.msra.mxu2 %v1271_v30 }
 0x3a4   :  { %1245 = vmatpush.msra.mxu2 %v1272_v1 }
 0x410   :  { %v767_v26 = vpop.f32.mrf.mxu2 }
 0x411   :  { %v770_v28 = vperm.slane %v767_v26, 0  ;;  %v775_v35 = vperm.slane %v767_v26, 1 }
 0x413   :  { %v771_v36 = vmul.f32 %v770_v28, %v2011_v53  ;;  %v772_v37 = vmul.f32 %v770_v28, %v2014_v45  ;;  %v773_v40 = vmul.f32 %v770_v28, %v2017_v63  ;;  %v774_v42 = vmul.f32 %v770_v28, %v2020_v9  ;;  %v1273_v53 = vld [vmem:[%s2350_s4 + $0x18] sm:$0xff]  ;;  %v1274_v9 = vld [vmem:[%s2350_s4 + $0x10] sm:$0xff] }
 0x414   :  { %1248 = vmatpush.msra.mxu3 %v1273_v53  ;;  %1247 = vmatpush.msra.mxu2 %v1273_v53 }
 0x415   :  { %v777_v2 = vadd.f32 %v775_v35, %v772_v37  ;;  %v778_v13 = vadd.f32 %v775_v35, %v773_v40  ;;  %v779_v49 = vadd.f32 %v775_v35, %v774_v42  ;;  %v776_v29 = vadd.f32 %v775_v35, %v771_v36 }
 0x416   :  { %1250 = vmatpush.msra.mxu3 %v1274_v9  ;;  %1249 = vmatpush.msra.mxu2 %v1274_v9 }
 0x417   :  { %vm781_vm12 = vcmp.ge.f32.partialorder %v777_v2, 0.0  ;;  %vm783_vm15 = vcmp.ge.f32.partialorder %v779_v49, 0.0  ;;  %v785_v45 = vmul.f32 0.01, %v777_v2  ;;  %v787_v63 = vmul.f32 0.01, %v779_v49 }
 0x418   :  { %vm780_vm8 = vcmp.ge.f32.partialorder %v776_v29, 0.0  ;;  %v784_v50 = vmul.f32 0.01, %v776_v29  ;;  %v786_v33 = vmul.f32 0.01, %v778_v13  ;;  %vm782_vm10 = vcmp.ge.f32.partialorder %v778_v13, 0.0  ;;  %1252 = vmatpush.msra.mxu3 %v1275_v54  ;;  %1251 = vmatpush.msra.mxu2 %v1275_v54 }
 0x419   :  { %v789_v39 = vsel %vm781_vm12, %v777_v2, %v785_v45  ;;  %v791_v48 = vsel %vm783_vm15, %v779_v49, %v787_v63 }
 0x41a   :  { %v788_v55 = vsel %vm780_vm8, %v776_v29, %v784_v50  ;;  %v795_v62 = vrot.slane %v791_v48, 7  ;;  %v801_v52 = vrot.slane %v789_v39, 1  ;;  %1254 = vmatpush.msra.mxu3 %v1276_v60  ;;  %v790_v61 = vsel %vm782_vm10, %v778_v13, %v786_v33  ;;  %1253 = vmatpush.msra.mxu2 %v1276_v60 }
 0x41b   :  { %v792_v8 = vrot.slane %v788_v55, 7  ;;  %v800_v59 = vrot.slane %v788_v55, 1  ;;  %918 = vmatmul.f32.vlgmr.msrb.gmra.mxu0 %v788_v55  ;;  %v793_v57 = vrot.slane %v789_v39, 7  ;;  %v802_v0 = vrot.slane %v790_v61, 1 }
 0x41c   :  { %v794_v23 = vrot.slane %v790_v61, 7  ;;  %v803_v11 = vrot.slane %v791_v48, 1 }
 0x41d   :  { %v799_v43 = vsel %vm105_vm0, %v795_v62, %v792_v8  ;;  %v806_v44 = vsel %vm187_vm1, %v800_v59, %v801_v52  ;;  %v798_v5 = vsel %vm105_vm0, %v792_v8, %v793_v57  ;;  %v805_v6 = vsel %vm187_vm1, %v801_v52, %v802_v0 }
 0x41e   :  { %v808_v56 = vsel %vm1498_vm4, %v799_v43, %v806_v44  ;;  %v812_v38 = vsel %vm1498_vm4, %v806_v44, %v799_v43  ;;  %v809_v7 = vsel %vm1585_vm9, %v798_v5, %v805_v6  ;;  %v813_v4 = vsel %vm1585_vm9, %v805_v6, %v798_v5 }
 0x41f   :  { %1218 = vmatmul.msk.f32.vlgmr.msrb.gmra.mxu3 %vm1555_vm6, %v808_v56  ;;  %947 = vmatmul.f32.vlgmr.msrb.gmra.mxu2 %v812_v38  ;;  %v797_v14 = vsel %vm105_vm0, %v793_v57, %v794_v23  ;;  %v804_v15 = vsel %vm187_vm1, %v802_v0, %v803_v11  ;;  %v796_v41 = vsel %vm105_vm0, %v794_v23, %v795_v62 }
 0x420   :  { %v810_v46 = vsel %vm1643_vm14, %v797_v14, %v804_v15  ;;  %v814_v34 = vsel %vm1643_vm14, %v804_v15, %v797_v14  ;;  %v807_v27 = vsel %vm187_vm1, %v803_v11, %v800_v59 }
 0x421   :  { %v811_v20 = vsel %vm1698_vm3, %v796_v41, %v807_v27  ;;  %v815_v47 = vsel %vm1698_vm3, %v807_v27, %v796_v41 }
 0x423   :  { %921 = vmatmul.f32.gmra.mxu0 %v789_v39 }
 0x427   :  { %892 = vmatmul.f32.gmra.mxu3 %v809_v7  ;;  %1220 = vmatmul.msk.f32.gmra.mxu2 %vm1609_vm11, %v813_v4 }
 0x42b   :  { %924 = vmatmul.f32.gmra.mxu0 %v790_v61 }
 0x42f   :  { %1219 = vmatmul.msk.f32.gmra.mxu3 %vm1670_vm2, %v810_v46  ;;  %953 = vmatmul.f32.gmra.mxu2 %v814_v34 }
 0x433   :  { %927 = vmatmul.f32.gmra.mxu0 %v791_v48 }
 0x437   :  { %898 = vmatmul.f32.gmra.mxu3 %v811_v20  ;;  %1221 = vmatmul.msk.f32.gmra.mxu2 %vm1712_vm5, %v815_v47 }
 0x498   :  { %v919_v58 = vpop.f32.mrf.mxu0 }
 0x4a0   :  { %v922_v12 = vpop.f32.mrf.mxu0 }
 0x4a2   :  { %v890_v3 = vpop.f32.mrf.mxu3  ;;  %v948_v17 = vpop.f32.mrf.mxu2 }
 0x4a3   :  { %v920_v21 = vadd.f32 %v919_v58, %v890_v3 }
 0x4a5   :  { %v2295_v18 = vadd.f32 %v948_v17, %v920_v21 }
 0x4a7   :  { %980 = vmatmul.f32.vlgmr.msrb.gmra.mxu1 %v2295_v18  ;;  %v960_v40 = vmul.f32 %v2295_v18, %v2295_v18 }
 0x4a8   :  { %v925_v10 = vpop.f32.mrf.mxu0 }
 0x4aa   :  { %v893_v31 = vpop.f32.mrf.mxu3  ;;  %v951_v19 = vpop.f32.mrf.mxu2 }
 0x4ab   :  { %v923_v51 = vadd.f32 %v922_v12, %v893_v31 }
 0x4ad   :  { %v2298_v22 = vadd.f32 %v951_v19, %v923_v51  ;;  %v1036_v19 = vld [vmem:[%s2352_s2 + $0x2] sm:$0x1] }
 0x4af   :  { %983 = vmatmul.f32.vlgmr.msra.gmra.mxu2 %v2298_v22  ;;  %v961_v42 = vmul.f32 %v2298_v22, %v2298_v22 }
 0x4b0   :  { %v928_v28 = vpop.f32.mrf.mxu0 }
 0x4b2   :  { %v896_v24 = vpop.f32.mrf.mxu3  ;;  %v954_v32 = vpop.f32.mrf.mxu2 }
 0x4b3   :  { %v926_v25 = vadd.f32 %v925_v10, %v896_v24 }
 0x4b5   :  { %v2301_v26 = vadd.f32 %v954_v32, %v926_v25  ;;  %v1049_v32 = vld [vmem:[%s2353_s3 + $0x2] sm:$0x1] }
 0x4b7   :  { %986 = vmatmul.f32.vlgmr.msra.gmra.mxu3 %v2301_v26  ;;  %v962_v1 = vmul.f32 %v2301_v26, %v2301_v26 }
 0x4ba   :  { %v899_v30 = vpop.f32.mrf.mxu3  ;;  %v957_v36 = vpop.f32.mrf.mxu2 }
 0x4bb   :  { %v929_v35 = vadd.f32 %v928_v28, %v899_v30 }
 0x4bd   :  { %v2304_v37 = vadd.f32 %v957_v36, %v929_v35 }
 0x4bf   :  { %989 = vmatmul.f32.gmra.mxu3 %v2304_v37  ;;  %v963_v2 = vmul.f32 %v2304_v37, %v2304_v37 }
 0x4c7   :  { %992 = vmatmul.f32.gmra.mxu3 %v960_v40 }
 0x4cf   :  { %995 = vmatmul.f32.gmra.mxu3 %v961_v42 }
 0x4d7   :  { %998 = vmatmul.f32.gmra.mxu3 %v962_v1 }
 0x4df   :  { %1001 = vmatmul.f32.gmra.mxu3 %v963_v2 }
 0x524   :  { %v981_v53 = vpop.f32.mrf.mxu1 }
 0x525   :  { %v1005_v9 = vsel %vm388_vm7, %v981_v53, 0.0 }
 0x532   :  { %v984_v29 = vpop.f32.mrf.mxu2 }
 0x533   :  { %v1006_v63 = vsel %vm388_vm7, %v984_v29, 0.0 }
 0x534   :  { %v1007_v33 = vadd.f32 %v1006_v63, %v1005_v9 }
 0x53a   :  { %v987_v13 = vpop.f32.mrf.mxu3 }
 0x53b   :  { %v1008_v50 = vsel %vm388_vm7, %v987_v13, 0.0 }
 0x53c   :  { %v1009_v48 = vadd.f32 %v1008_v50, %v1007_v33 }
 0x542   :  { %v990_v49 = vpop.f32.mrf.mxu3 }
 0x543   :  { %v1010_v39 = vsel %vm388_vm7, %v990_v49, 0.0 }
 0x544   :  { %v1011_v54 = vadd.f32 %v1010_v39, %v1009_v48 }
 0x546   :  { %v1012_v62 = vrot.slane %v1011_v54, 4 }
 0x548   :  { %v1013_v52 = vadd.f32 %v1012_v62, %v1011_v54 }
 0x54a   :  { %v993_v45 = vpop.f32.mrf.mxu3  ;;  %v1014_v60 = vrot.slane %v1013_v52, 2 }
 0x54b   :  { %v1018_v61 = vsel %vm388_vm7, %v993_v45, 0.0 }
 0x54c   :  { %v1015_v56 = vadd.f32 %v1014_v60, %v1013_v52 }
 0x54e   :  { %v1016_v6 = vrot.slane %v1015_v56, 1 }
 0x550   :  { %v1017_v23 = vadd.f32 %v1016_v6, %v1015_v56 }
 0x552   :  { %v996_v55 = vpop.f32.mrf.mxu3  ;;  %v1031_v15 = vmul.f32 0.001953125, %v1017_v23 }
 0x553   :  { %v1019_v59 = vsel %vm388_vm7, %v996_v55, 0.0 }
 0x554   :  { %v1020_v44 = vadd.f32 %v1019_v59, %v1018_v61  ;;  %v1033_v41 = vmul.f32 %v1031_v15, %v1031_v15 }
 0x55a   :  { %v999_v8 = vpop.f32.mrf.mxu3 }
 0x55b   :  { %v1021_v43 = vsel %vm388_vm7, %v999_v8, 0.0 }
 0x55c   :  { %v1022_v38 = vadd.f32 %v1021_v43, %v1020_v44 }
 0x562   :  { %v1002_v57 = vpop.f32.mrf.mxu3 }
 0x563   :  { %v1023_v0 = vsel %vm388_vm7, %v1002_v57, 0.0 }
 0x564   :  { %v1024_v5 = vadd.f32 %v1023_v0, %v1022_v38 }
 0x566   :  { %v1025_v7 = vrot.slane %v1024_v5, 4 }
 0x568   :  { %v1026_v4 = vadd.f32 %v1025_v7, %v1024_v5 }
 0x56a   :  { %v1027_v11 = vrot.slane %v1026_v4, 2 }
 0x56c   :  { %v1028_v14 = vadd.f32 %v1027_v11, %v1026_v4 }
 0x56e   :  { %v1029_v46 = vrot.slane %v1028_v14, 1 }
 0x570   :  { %v1030_v34 = vadd.f32 %v1029_v46, %v1028_v14 }
 0x572   :  { %v1032_v27 = vmul.f32 0.001953125, %v1030_v34 }
 0x574   :  { %v1034_v20 = vsub.f32 %v1032_v27, %v1033_v41 }
 0x576   :  { %v1035_v47 = vmax.f32 %v1034_v20, 0.0 }
 0x578   :  { %v1037_v58 = vadd.f32 1e-05, %v1035_v47 }
 0x57a   :  { %1259 = vrsqrt.f32 %v1037_v58  ;;  %vm1044_vm1 = vweird.f32 %v1037_v58 }
 0x580   :  { %v1260_v3 = vpop.eup %1259 }
 0x581   :  { %v1039_v17 = vmul.f32 %v1260_v3, %v1037_v58  ;;  %vm1045_vm0 = vweird.f32 %v1260_v3 }
 0x582   :  { %vm1046_vm4 = vmor %vm1044_vm1, %vm1045_vm0 }
 0x583   :  { %v1040_v21 = vmul.f32 %v1260_v3, %v1039_v17 }
 0x585   :  { %v1041_v12 = vmul.f32 0.5, %v1040_v21 }
 0x587   :  { %v1042_v31 = vsub.f32 1.5, %v1041_v12 }
 0x589   :  { %v1043_v51 = vmul.f32 %v1260_v3, %v1042_v31 }
 0x58b   :  { %v1047_v10 = vsel %vm1046_vm4, %v1260_v3, %v1043_v51 }
 0x58c   :  { %v1048_v24 = vmul.f32 %v1047_v10, %v1036_v19 }
 0x58e   :  { %v1050_v25 = vmul.f32 %v1048_v24, %v1031_v15  ;;  %v1052_v30 = vperm.slane %v1048_v24, 0 }
 0x590   :  { %v1051_v28 = vsub.f32 %v1049_v32, %v1050_v25 }
 0x592   :  { %v1053_v35 = vperm.slane %v1051_v28, 0 }
 0x594   :  { %v1054_v36 = vsel %vm170_vm13, %v1052_v30, %v1053_v35 }
 0x595   :  { %1222 = vmatmul.msk.f32.vlgmr.msra.gmra.mxu0 %vm388_vm7, %v1054_v36 }
 0x612   :  { %v1075_v40 = vpop.f32.mrf.mxu0 }
 0x613   :  { %v1078_v42 = vperm.slane %v1075_v40, 0  ;;  %v1083_v1 = vperm.slane %v1075_v40, 1 }
 0x615   :  { %v1079_v2 = vmul.f32 %v1078_v42, %v2295_v18  ;;  %v1080_v13 = vmul.f32 %v1078_v42, %v2298_v22  ;;  %v1081_v49 = vmul.f32 %v1078_v42, %v2301_v26  ;;  %v1082_v29 = vmul.f32 %v1078_v42, %v2304_v37 }
 0x617   :  { %v1084_v53 = vadd.f32 %v1083_v1, %v1079_v2  ;;  %v1085_v45 = vadd.f32 %v1083_v1, %v1080_v13  ;;  %v1086_v63 = vadd.f32 %v1083_v1, %v1081_v49  ;;  %v1087_v9 = vadd.f32 %v1083_v1, %v1082_v29 }
 0x619   :  { %vm1088_vm6 = vcmp.ge.f32.partialorder %v1084_v53, 0.0  ;;  %vm1089_vm9 = vcmp.ge.f32.partialorder %v1085_v45, 0.0  ;;  %vm1090_vm11 = vcmp.ge.f32.partialorder %v1086_v63, 0.0  ;;  %vm1091_vm14 = vcmp.ge.f32.partialorder %v1087_v9, 0.0 }
 0x61a   :  { %v1092_v16 = vmul.f32 0.01, %v1084_v53  ;;  %v1093_v50 = vmul.f32 0.01, %v1085_v45  ;;  %v1094_v33 = vmul.f32 0.01, %v1086_v63 }
 0x61b   :  { %v1095_v39 = vmul.f32 0.01, %v1087_v9 }
 0x61c   :  { %v1096_v48 = vsel %vm1088_vm6, %v1084_v53, %v1092_v16  ;;  %v1097_v18 = vsel %vm1089_vm9, %v1085_v45, %v1093_v50  ;;  %v1098_v54 = vsel %vm1090_vm11, %v1086_v63, %v1094_v33 }
 0x61d   :  { %v1099_v22 = vsel %vm1091_vm14, %v1087_v9, %v1095_v39  ;;  %1100 = vst [vmem:[%s2354_s6] sm:$0xff] %v1096_v48 }
 0x61e   :  { %1101 = vst [vmem:[%s2354_s6 + $0x8] sm:$0xff] %v1097_v18 }
 0x61f   :  { %1102 = vst [vmem:[%s2354_s6 + $0x10] sm:$0xff] %v1098_v54 }
 0x620   :  { %1103 = vst [vmem:[%s2354_s6 + $0x18] sm:$0xff] %v1099_v22 }

</bundles_post_ra>
